<compile_context>
chip_gen: v5e
topology: v5e:2x2
jax: 0.10.0
libtpu: 0.0.40
codegen_flags: <defaults>
</compile_context>

<pallas_src>
import functools

import jax
import jax.numpy as jnp
import numpy as np
from jax.experimental import pallas as pl
from jax.experimental.pallas import tpu as pltpu


def _decoder_layer_kernel(
    # per-batch data blocks
    dec_qk_ref, dec_v_ref, enc_qk_ref, enc_v_ref,
    # stage 1 (self-attention) packed weights
    wqk1_ref, wv1_ref, wfc1_ref, ln1_ref, m1_ref, avg1_ref,
    # stage 2 (enc-dec attention) packed weights
    wq2_ref, wk2_ref, wv2_ref, wfc2_ref, ln2_ref, m2_ref,
    # stage 3 (FFN) packed weights
    wp1_ref, wp2_ref,
    # outputs
    out_ref, slf_attn_ref, enc_attn_ref,
    *, f_hid, alpha, eps):
    f32 = jnp.float32

    def leaky(x):
        return jnp.where(x > 0, x, alpha * x)

    def softmax_rows(logits):
        m = jnp.max(logits, axis=-1, keepdims=True)
        e = jnp.exp(logits - m)
        return e * pl.reciprocal(jnp.sum(e, axis=-1, keepdims=True), approx=True)

    def block_layer_norm(x, ones_blk, gamma, beta):
        # x: (t, n*f) lane-packed over n.  ones_blk = kron(I_n, 11^T / f), so a
        # single MXU matmul produces each n-block's mean broadcast back onto
        # its own lanes; same trick for the variance.
        mu = jnp.dot(x, ones_blk, preferred_element_type=f32)
        d = x - mu
        var = jnp.dot(d * d, ones_blk, preferred_element_type=f32)
        return d * jax.lax.rsqrt(var + eps) * gamma + beta

    # ---- stage 1: decoder self-attention (q == k == dec_qk) --------------
    # Fused [q|k] projection; 1/temperature already folded into the q half.
    qk1 = jnp.dot(dec_qk_ref[...], wqk1_ref[...], preferred_element_type=f32)
    qh1 = qk1[:, :f_hid]
    kh1 = qk1[:, f_hid:2 * f_hid]
    logits1 = jax.lax.dot_general(qh1, kh1, (((1,), (1,)), ((), ())),
                                  preferred_element_type=f32)           # (t, t)
    attn1 = softmax_rows(logits1)
    slf_attn_ref[...] = attn1

    vh1 = jnp.dot(dec_v_ref[...], wv1_ref[...],
                  preferred_element_type=f32)                           # (t, n*h)
    ctx1 = jnp.dot(attn1, vh1, preferred_element_type=f32)              # (t, n*h)
    y1 = leaky(jnp.dot(ctx1, wfc1_ref[...], preferred_element_type=f32))
    y1 = block_layer_norm(y1, m1_ref[...], ln1_ref[0:1, :], ln1_ref[1:2, :])

    # Mean over the lane-packed n axis: one matmul against kron(1_n/n, I_h).
    dec_flat = jnp.dot(y1, avg1_ref[...], preferred_element_type=f32)   # (t, h)

    # ---- stage 2: encoder-decoder attention ------------------------------
    qh2 = jnp.dot(dec_flat, wq2_ref[...], preferred_element_type=f32)   # (t, h)
    kh2 = jnp.dot(enc_qk_ref[...], wk2_ref[...],
                  preferred_element_type=f32)                           # (te, h)
    logits2 = jax.lax.dot_general(qh2, kh2, (((1,), (1,)), ((), ())),
                                  preferred_element_type=f32)           # (t, te)
    attn2 = softmax_rows(logits2)
    enc_attn_ref[...] = attn2

    vh2 = jnp.dot(enc_v_ref[...], wv2_ref[...],
                  preferred_element_type=f32)                           # (te, ne*h)
    ctx2 = jnp.dot(attn2, vh2, preferred_element_type=f32)              # (t, ne*h)
    y2 = leaky(jnp.dot(ctx2, wfc2_ref[...], preferred_element_type=f32))  # (t, ne*f1)
    y2 = block_layer_norm(y2, m2_ref[...], ln2_ref[0:1, :], ln2_ref[1:2, :])

    # ---- stage 3: position-wise FFN, lane-packed over n_e -> 128-lane store
    hmid = leaky(jnp.dot(y2, wp1_ref[...], preferred_element_type=f32))   # (t, ne*ffn)
    out_ref[...] = leaky(jnp.dot(hmid, wp2_ref[...],
                                 preferred_element_type=f32))             # (t, ne*f1)


def decoder_layer(dec_input_qk, dec_input_v, enc_output_qk, enc_output_v,
                  params, *, alpha=0.2, eps=1e-5):
    """Returns (dec_output (b,n_e,t,f1), dec_slf_attn (b,t,t), dec_enc_attn (b,t,t_e))."""
    (wq1, wk1, wv1, wfc1, g1, be1,
     wq2, wk2, wv2, wfc2, g2, be2, wp1, wp2) = params
    b, t_dec, f0 = dec_input_qk.shape
    _, n_dec, _, _ = dec_input_v.shape
    _, t_enc, e0 = enc_output_qk.shape
    _, n_enc, _, _ = enc_output_v.shape
    f_hid = wq1.shape[1]
    f1 = wfc2.shape[1]
    f_ffn = wp1.shape[1]
    f32 = jnp.float32
    # Both MHAs use temperature = sqrt(q_h) with q_h == f_hid (module asserts
    # q_h == k_h); folded into the q weights once, host-side.
    inv_temp = float(1.0 / np.sqrt(f_hid))

    # ---- host-side packing (tiny, one-off XLA ops) ------------------------
    # v: (b, n, t, f) -> lane-packed (b, t, n*f): every in-kernel matmul is a
    # plain 2-D MXU op and the tensors stay lane-dense end to end.
    dec_v_packed = jnp.transpose(dec_input_v, (0, 2, 1, 3)).reshape(
        b, t_dec, n_dec * f0)
    enc_v_packed = jnp.transpose(enc_output_v, (0, 2, 1, 3)).reshape(
        b, t_enc, n_enc * e0)

    def blockdiag(w, n):
        return jnp.kron(jnp.eye(n, dtype=f32), w.astype(f32))

    # stage 1
    wqk1 = jnp.concatenate([wq1 * inv_temp, wk1], axis=1)        # (f0, 2h)
    wv1_blk = blockdiag(wv1, n_dec)                              # (n*f0, n*h)
    wfc1_blk = blockdiag(wfc1, n_dec)                            # (n*h, n*h)
    ln1 = jnp.concatenate([jnp.tile(g1, (1, n_dec)),
                           jnp.tile(be1, (1, n_dec))], axis=0)   # (2, n*h)
    m1 = blockdiag(jnp.full((f_hid, f_hid), 1.0 / f_hid, f32), n_dec)
    avg1 = jnp.kron(jnp.full((n_dec, 1), 1.0 / n_dec, f32),
                    jnp.eye(f_hid, dtype=f32))                   # (n*h, h)
    # stage 2
    wq2s = wq2 * inv_temp
    wv2_blk = blockdiag(wv2, n_enc)                              # (ne*e0, ne*h)
    wfc2_blk = blockdiag(wfc2, n_enc)                            # (ne*h, ne*f1)
    ln2 = jnp.concatenate([jnp.tile(g2, (1, n_enc)),
                           jnp.tile(be2, (1, n_enc))], axis=0)   # (2, ne*f1)
    m2 = blockdiag(jnp.full((f1, f1), 1.0 / f1, f32), n_enc)
    # stage 3 (block-diagonal so the output stays lane-packed over n_e)
    wp1_blk = blockdiag(wp1, n_enc)                              # (ne*f1, ne*ffn)
    wp2_blk = blockdiag(wp2, n_enc)                              # (ne*ffn, ne*f1)

    kernel = functools.partial(_decoder_layer_kernel, f_hid=f_hid,
                               alpha=alpha, eps=eps)

    out_shapes = (
        jax.ShapeDtypeStruct((b, t_dec, n_enc * f1), f32),   # lane-dense output
        jax.ShapeDtypeStruct((b, t_dec, t_dec), f32),        # dec_slf_attn
        jax.ShapeDtypeStruct((b, t_dec, t_enc), f32),        # dec_enc_attn
    )

    def full(shape):
        return pl.BlockSpec(shape, lambda i, _n=len(shape): (0,) * _n)

    def batched(shape):
        return pl.BlockSpec((None,) + shape,
                            lambda i, _n=len(shape): (i,) + (0,) * _n)

    grid_spec = pltpu.PrefetchScalarGridSpec(
        num_scalar_prefetch=0,
        grid=(b,),
        in_specs=[
            batched((t_dec, f0)),                    # dec_input_qk
            batched((t_dec, n_dec * f0)),            # dec_v lane-packed
            batched((t_enc, e0)),                    # enc_output_qk
            batched((t_enc, n_enc * e0)),            # enc_v lane-packed
            full((f0, 2 * f_hid)),                   # [wq1|wk1] (temp folded)
            full((n_dec * f0, n_dec * f_hid)),       # wv1 block-diag
            full((n_dec * f_hid, n_dec * f_hid)),    # wfc1 block-diag
            full((2, n_dec * f_hid)),                # gamma1/beta1 tiled
            full((n_dec * f_hid, n_dec * f_hid)),    # LN1 block-mean matrix
            full((n_dec * f_hid, f_hid)),            # mean-over-n matrix
            full((f_hid, f_hid)),                    # wq2 (temp folded)
            full((e0, f_hid)),                       # wk2
            full((n_enc * e0, n_enc * f_hid)),       # wv2 block-diag
            full((n_enc * f_hid, n_enc * f1)),       # wfc2 block-diag
            full((2, n_enc * f1)),                   # gamma2/beta2 tiled
            full((n_enc * f1, n_enc * f1)),          # LN2 block-mean matrix
            full((n_enc * f1, n_enc * f_ffn)),       # FFN w1 block-diag
            full((n_enc * f_ffn, n_enc * f1)),       # FFN w2 block-diag
        ],
        out_specs=[
            batched((t_dec, n_enc * f1)),
            batched((t_dec, t_dec)),
            batched((t_dec, t_enc)),
        ],
    )

    out_rows, slf_attn, enc_attn = pl.pallas_call(
        kernel,
        out_shape=out_shapes,
        grid_spec=grid_spec,
        compiler_params=pltpu.CompilerParams(
            dimension_semantics=("parallel",),      # b -> one batch per v7x TC
            vmem_limit_bytes=32 * 1024 * 1024),
    )(dec_input_qk, dec_v_packed, enc_output_qk, enc_v_packed,
      wqk1, wv1_blk, wfc1_blk, ln1, m1, avg1,
      wq2s, wk2, wv2_blk, wfc2_blk, ln2, m2, wp1_blk, wp2_blk)

    # unpack the lane-dense (b, t, n_e*f1) slab back to (b, n_e, t, f1).
    dec_output = jnp.transpose(out_rows.reshape(b, t_dec, n_enc, f1),
                               (0, 2, 1, 3))
    return dec_output, slf_attn, enc_attn


def _reference(dec_input_qk, dec_input_v, enc_output_qk, enc_output_v, params,
               *, alpha=0.2, eps=1e-5):
    """Pure-JAX reference matching the PyTorch DecoderLayer forward."""
    (wq1, wk1, wv1, wfc1, g1, be1,
     wq2, wk2, wv2, wfc2, g2, be2, wp1, wp2) = params
    f_hid = wq1.shape[1]

    def leaky(x):
        return jnp.where(x > 0, x, alpha * x)

    def layer_norm(x, gamma, beta):
        mu = jnp.mean(x, axis=-1, keepdims=True)
        var = jnp.mean((x - mu) ** 2, axis=-1, keepdims=True)
        return (x - mu) * jax.lax.rsqrt(var + eps) * gamma[0] + beta[0]

    def mha(q, k, v, wq, wk, wv, wfc, gamma, beta):
        qh = q @ wq
        kh = k @ wk
        vh = jnp.einsum('bntf,fh->bnth', v, wv)
        logits = jnp.einsum('bqd,bkd->bqk', qh, kh) / np.sqrt(f_hid)
        attn = jax.nn.softmax(logits, axis=-1)
        ctx = jnp.einsum('bqt,bnth->bnqh', attn, vh)
        y = leaky(jnp.einsum('bnqh,hf->bnqf', ctx, wfc))
        return layer_norm(y, gamma, beta), attn

    y1, a1 = mha(dec_input_qk, dec_input_qk, dec_input_v,
                 wq1, wk1, wv1, wfc1, g1, be1)
    dec_flat = jnp.mean(y1, axis=1)
    y2, a2 = mha(dec_flat, enc_output_qk, enc_output_v,
                 wq2, wk2, wv2, wfc2, g2, be2)
    z = leaky(leaky(y2 @ wp1) @ wp2)
    return z, a1, a2


if __name__ == "__main__":
    # DecoderLayer(f0, enc_f0, f_hid, f1) at small shapes; n_e*f1 = 128.
    f0, enc_f0, f_hid, f1 = 8, 8, 16, 32
    f_ffn = 2 * f1
    b, t, n = 2, 8, 4          # decoder: batch, time, #value slices
    t_e, n_e = 8, 4            # encoder: time, #value slices

    key = jax.random.PRNGKey(0)
    keys = jax.random.split(key, 18)

    dec_qk = jax.random.normal(keys[0], (b, t, f0), dtype=jnp.float32)
    dec_v = jax.random.normal(keys[1], (b, n, t, f0), dtype=jnp.float32)
    enc_qk = jax.random.normal(keys[2], (b, t_e, enc_f0), dtype=jnp.float32)
    enc_v = jax.random.normal(keys[3], (b, n_e, t_e, enc_f0), dtype=jnp.float32)

    def normal(k, shape, std):
        return jax.random.normal(k, shape, dtype=jnp.float32) * std

    # Self-attention MHA: f0 -> f_hid, fc f_hid -> f_hid, LayerNorm(f_hid).
    wq1 = normal(keys[4], (f0, f_hid), np.sqrt(2.0 / (f0 + f_hid)))
    wk1 = normal(keys[5], (f0, f_hid), np.sqrt(2.0 / (f0 + f_hid)))
    wv1 = normal(keys[6], (f0, f_hid), np.sqrt(2.0 / (f0 + f_hid)))
    wfc1 = normal(keys[7], (f_hid, f_hid), np.sqrt(2.0 / (f_hid + f_hid)))
    g1 = 1.0 + 0.1 * jax.random.normal(keys[8], (1, f_hid), dtype=jnp.float32)
    be1 = 0.1 * jax.random.normal(keys[9], (1, f_hid), dtype=jnp.float32)

    # Enc-dec MHA: q f_hid->f_hid, k/v enc_f0->f_hid, fc f_hid->f1, LayerNorm(f1).
    wq2 = normal(keys[10], (f_hid, f_hid), np.sqrt(2.0 / (f_hid + f_hid)))
    wk2 = normal(keys[11], (enc_f0, f_hid), np.sqrt(2.0 / (enc_f0 + f_hid)))
    wv2 = normal(keys[12], (enc_f0, f_hid), np.sqrt(2.0 / (enc_f0 + f_hid)))
    wfc2 = normal(keys[13], (f_hid, f1), np.sqrt(2.0 / (f_hid + f1)))
    g2 = 1.0 + 0.1 * jax.random.normal(keys[14], (1, f1), dtype=jnp.float32)
    be2 = 0.1 * jax.random.normal(keys[15], (1, f1), dtype=jnp.float32)

    # Position-wise FFN: f1 -> 2*f1 -> f1 (xavier_normal, gain=1.414).
    wp1 = normal(keys[16], (f1, f_ffn), 1.414 * np.sqrt(2.0 / (f1 + f_ffn)))
    wp2 = normal(keys[17], (f_ffn, f1), 1.414 * np.sqrt(2.0 / (f_ffn + f1)))

    params = (wq1, wk1, wv1, wfc1, g1, be1,
              wq2, wk2, wv2, wfc2, g2, be2, wp1, wp2)

    out, slf_attn, enc_attn = decoder_layer(dec_qk, dec_v, enc_qk, enc_v, params)
    out = jax.block_until_ready(out)
    slf_attn = jax.block_until_ready(slf_attn)
    enc_attn = jax.block_until_ready(enc_attn)

    ref_out, ref_slf, ref_enc = _reference(dec_qk, dec_v, enc_qk, enc_v, params)
    assert out.shape == (b, n_e, t, f1)
    assert slf_attn.shape == (b, t, t) and enc_attn.shape == (b, t, t_e)
    # approx=True softmax reciprocal -> allow a small relative slack.
    np.testing.assert_allclose(np.asarray(out), np.asarray(ref_out),
                               rtol=5e-3, atol=5e-3)
    np.testing.assert_allclose(np.asarray(slf_attn), np.asarray(ref_slf),
                               rtol=5e-3, atol=5e-3)
    np.testing.assert_allclose(np.asarray(enc_attn), np.asarray(ref_enc),
                               rtol=5e-3, atol=5e-3)

    print("KERNEL_OK")
</pallas_src>

<mosaic_0001>
module attributes {stable_mosaic.version = 11 : i64} {
  func.func @_decoder_layer_kernel(%arg0: i32, %arg1: memref<1x8x8xf32, #tpu.memory_space<vmem>>, %arg2: memref<1x8x32xf32, #tpu.memory_space<vmem>>, %arg3: memref<1x8x8xf32, #tpu.memory_space<vmem>>, %arg4: memref<1x8x32xf32, #tpu.memory_space<vmem>>, %arg5: memref<8x32xf32, #tpu.memory_space<vmem>>, %arg6: memref<32x64xf32, #tpu.memory_space<vmem>>, %arg7: memref<64x64xf32, #tpu.memory_space<vmem>>, %arg8: memref<2x64xf32, #tpu.memory_space<vmem>>, %arg9: memref<64x64xf32, #tpu.memory_space<vmem>>, %arg10: memref<64x16xf32, #tpu.memory_space<vmem>>, %arg11: memref<16x16xf32, #tpu.memory_space<vmem>>, %arg12: memref<8x16xf32, #tpu.memory_space<vmem>>, %arg13: memref<32x64xf32, #tpu.memory_space<vmem>>, %arg14: memref<64x128xf32, #tpu.memory_space<vmem>>, %arg15: memref<2x128xf32, #tpu.memory_space<vmem>>, %arg16: memref<128x128xf32, #tpu.memory_space<vmem>>, %arg17: memref<128x256xf32, #tpu.memory_space<vmem>>, %arg18: memref<256x128xf32, #tpu.memory_space<vmem>>, %arg19: memref<1x8x128xf32, #tpu.memory_space<vmem>>, %arg20: memref<1x8x8xf32, #tpu.memory_space<vmem>>, %arg21: memref<1x8x8xf32, #tpu.memory_space<vmem>>) attributes {dimension_semantics = [#tpu.dimension_semantics<parallel>], iteration_bounds = array<i64: 2>, scalar_prefetch = 0 : i64, scratch_operands = 0 : i64, tpu.core_type = #tpu.core_type<tc>, window_params = [{transform_indices = @transform_0, window_bounds = array<i64: 1, 8, 8>}, {transform_indices = @transform_1, window_bounds = array<i64: 1, 8, 32>}, {transform_indices = @transform_2, window_bounds = array<i64: 1, 8, 8>}, {transform_indices = @transform_3, window_bounds = array<i64: 1, 8, 32>}, {pipeline_mode = #tpu.pipeline_mode<synchronous>, transform_indices = @transform_4, window_bounds = array<i64: 8, 32>}, {pipeline_mode = #tpu.pipeline_mode<synchronous>, transform_indices = @transform_5, window_bounds = array<i64: 32, 64>}, {pipeline_mode = #tpu.pipeline_mode<synchronous>, transform_indices = @transform_6, window_bounds = array<i64: 64, 64>}, {pipeline_mode = #tpu.pipeline_mode<synchronous>, transform_indices = @transform_7, window_bounds = array<i64: 2, 64>}, {pipeline_mode = #tpu.pipeline_mode<synchronous>, transform_indices = @transform_8, window_bounds = array<i64: 64, 64>}, {pipeline_mode = #tpu.pipeline_mode<synchronous>, transform_indices = @transform_9, window_bounds = array<i64: 64, 16>}, {pipeline_mode = #tpu.pipeline_mode<synchronous>, transform_indices = @transform_10, window_bounds = array<i64: 16, 16>}, {pipeline_mode = #tpu.pipeline_mode<synchronous>, transform_indices = @transform_11, window_bounds = array<i64: 8, 16>}, {pipeline_mode = #tpu.pipeline_mode<synchronous>, transform_indices = @transform_12, window_bounds = array<i64: 32, 64>}, {pipeline_mode = #tpu.pipeline_mode<synchronous>, transform_indices = @transform_13, window_bounds = array<i64: 64, 128>}, {pipeline_mode = #tpu.pipeline_mode<synchronous>, transform_indices = @transform_14, window_bounds = array<i64: 2, 128>}, {pipeline_mode = #tpu.pipeline_mode<synchronous>, transform_indices = @transform_15, window_bounds = array<i64: 128, 128>}, {pipeline_mode = #tpu.pipeline_mode<synchronous>, transform_indices = @transform_16, window_bounds = array<i64: 128, 256>}, {pipeline_mode = #tpu.pipeline_mode<synchronous>, transform_indices = @transform_17, window_bounds = array<i64: 256, 128>}, {transform_indices = @transform_18, window_bounds = array<i64: 1, 8, 128>}, {transform_indices = @transform_19, window_bounds = array<i64: 1, 8, 8>}, {transform_indices = @transform_20, window_bounds = array<i64: 1, 8, 8>}]} {
    %c0 = arith.constant 0 : index
    %c0_0 = arith.constant 0 : index
    %c0_1 = arith.constant 0 : index
    %0 = vector.load %arg1[%c0, %c0_0, %c0_1] : memref<1x8x8xf32, #tpu.memory_space<vmem>>, vector<1x8x8xf32>
    %1 = vector.shape_cast %0 : vector<1x8x8xf32> to vector<8x8xf32>
    %c0_2 = arith.constant 0 : index
    %c0_3 = arith.constant 0 : index
    %2 = vector.load %arg5[%c0_2, %c0_3] : memref<8x32xf32, #tpu.memory_space<vmem>>, vector<8x32xf32>
    %cst = arith.constant dense<0.000000e+00> : vector<8x32xf32>
    %3 = tpu.matmul %1, %2, %cst {dimension_numbers = #tpu.dot_dimension_numbers<[1], [0], [0], [1], [0, 0, 1, 1], [], []>} : vector<8x8xf32>, vector<8x32xf32>, vector<8x32xf32> -> vector<8x32xf32>
    %4 = vector.extract_strided_slice %3 {offsets = [0, 0], sizes = [8, 16], strides = [1, 1]} : vector<8x32xf32> to vector<8x16xf32>
    %5 = vector.extract_strided_slice %3 {offsets = [0, 16], sizes = [8, 16], strides = [1, 1]} : vector<8x32xf32> to vector<8x16xf32>
    %cst_4 = arith.constant dense<0.000000e+00> : vector<8x8xf32>
    %6 = tpu.matmul %4, %5, %cst_4 {dimension_numbers = #tpu.dot_dimension_numbers<[1], [1], [0], [0], [0, 0, 1, 0], [], []>} : vector<8x16xf32>, vector<8x16xf32>, vector<8x8xf32> -> vector<8x8xf32>
    %cst_5 = arith.constant dense<0xFF800000> : vector<8xf32>
    %7 = vector.multi_reduction <maximumf>, %6, %cst_5 [1] : vector<8x8xf32> to vector<8xf32>
    %8 = vector.shape_cast %7 : vector<8xf32> to vector<8x1xf32>
    %9 = vector.broadcast %8 : vector<8x1xf32> to vector<8x8xf32>
    %10 = arith.subf %6, %9 : vector<8x8xf32>
    %11 = math.exp %10 : vector<8x8xf32>
    %cst_6 = arith.constant dense<0.000000e+00> : vector<8xf32>
    %12 = vector.multi_reduction <add>, %11, %cst_6 [1] : vector<8x8xf32> to vector<8xf32>
    %13 = vector.shape_cast %12 : vector<8xf32> to vector<8x1xf32>
    %14 = tpu.reciprocal %13 {approx = true} : vector<8x1xf32> -> vector<8x1xf32>
    %15 = vector.broadcast %14 : vector<8x1xf32> to vector<8x8xf32>
    %16 = arith.mulf %11, %15 : vector<8x8xf32>
    %c0_7 = arith.constant 0 : index
    %c0_8 = arith.constant 0 : index
    %c0_9 = arith.constant 0 : index
    %17 = vector.load %arg20[%c0_7, %c0_8, %c0_9] : memref<1x8x8xf32, #tpu.memory_space<vmem>>, vector<1x8x8xf32>
    %18 = vector.shape_cast %17 : vector<1x8x8xf32> to vector<8x8xf32>
    %19 = vector.shape_cast %16 : vector<8x8xf32> to vector<1x8x8xf32>
    tpu.vector_store %arg20[%c0_7, %c0_8, %c0_9], %19 {strides = array<i32>} : memref<1x8x8xf32, #tpu.memory_space<vmem>>, vector<1x8x8xf32>,
    %c0_10 = arith.constant 0 : index
    %c0_11 = arith.constant 0 : index
    %c0_12 = arith.constant 0 : index
    %20 = vector.load %arg2[%c0_10, %c0_11, %c0_12] : memref<1x8x32xf32, #tpu.memory_space<vmem>>, vector<1x8x32xf32>
    %21 = vector.shape_cast %20 : vector<1x8x32xf32> to vector<8x32xf32>
    %c0_13 = arith.constant 0 : index
    %c0_14 = arith.constant 0 : index
    %22 = vector.load %arg6[%c0_13, %c0_14] : memref<32x64xf32, #tpu.memory_space<vmem>>, vector<32x64xf32>
    %cst_15 = arith.constant dense<0.000000e+00> : vector<8x64xf32>
    %23 = tpu.matmul %21, %22, %cst_15 {dimension_numbers = #tpu.dot_dimension_numbers<[1], [0], [0], [1], [0, 0, 1, 1], [], []>} : vector<8x32xf32>, vector<32x64xf32>, vector<8x64xf32> -> vector<8x64xf32>
    %cst_16 = arith.constant dense<0.000000e+00> : vector<8x64xf32>
    %24 = tpu.matmul %16, %23, %cst_16 {dimension_numbers = #tpu.dot_dimension_numbers<[1], [0], [0], [1], [0, 0, 1, 1], [], []>} : vector<8x8xf32>, vector<8x64xf32>, vector<8x64xf32> -> vector<8x64xf32>
    %c0_17 = arith.constant 0 : index
    %c0_18 = arith.constant 0 : index
    %25 = vector.load %arg7[%c0_17, %c0_18] : memref<64x64xf32, #tpu.memory_space<vmem>>, vector<64x64xf32>
    %cst_19 = arith.constant dense<0.000000e+00> : vector<8x64xf32>
    %26 = tpu.matmul %24, %25, %cst_19 {dimension_numbers = #tpu.dot_dimension_numbers<[1], [0], [0], [1], [0, 0, 1, 1], [], []>} : vector<8x64xf32>, vector<64x64xf32>, vector<8x64xf32> -> vector<8x64xf32>
    %cst_20 = arith.constant 0.000000e+00 : f32
    %27 = vector.broadcast %cst_20 : f32 to vector<8x64xf32>
    %28 = arith.cmpf ogt, %26, %27 : vector<8x64xf32>
    %cst_21 = arith.constant 2.000000e-01 : f32
    %29 = vector.broadcast %cst_21 : f32 to vector<8x64xf32>
    %30 = arith.mulf %29, %26 : vector<8x64xf32>
    %31 = arith.select %28, %26, %30 : vector<8x64xi1>, vector<8x64xf32>
    %c0_22 = arith.constant 0 : index
    %c0_23 = arith.constant 0 : index
    %32 = vector.load %arg9[%c0_22, %c0_23] : memref<64x64xf32, #tpu.memory_space<vmem>>, vector<64x64xf32>
    %c0_24 = arith.constant 0 : index
    %c0_25 = arith.constant 0 : index
    %33 = vector.load %arg8[%c0_24, %c0_25] : memref<2x64xf32, #tpu.memory_space<vmem>>, vector<1x64xf32>
    %c1 = arith.constant 1 : index
    %c0_26 = arith.constant 0 : index
    %34 = vector.load %arg8[%c1, %c0_26] : memref<2x64xf32, #tpu.memory_space<vmem>>, vector<1x64xf32>
    %cst_27 = arith.constant dense<0.000000e+00> : vector<8x64xf32>
    %35 = tpu.matmul %31, %32, %cst_27 {dimension_numbers = #tpu.dot_dimension_numbers<[1], [0], [0], [1], [0, 0, 1, 1], [], []>} : vector<8x64xf32>, vector<64x64xf32>, vector<8x64xf32> -> vector<8x64xf32>
    %36 = arith.subf %31, %35 : vector<8x64xf32>
    %37 = arith.mulf %36, %36 : vector<8x64xf32>
    %cst_28 = arith.constant dense<0.000000e+00> : vector<8x64xf32>
    %38 = tpu.matmul %37, %32, %cst_28 {dimension_numbers = #tpu.dot_dimension_numbers<[1], [0], [0], [1], [0, 0, 1, 1], [], []>} : vector<8x64xf32>, vector<64x64xf32>, vector<8x64xf32> -> vector<8x64xf32>
    %cst_29 = arith.constant 9.99999974E-6 : f32
    %39 = vector.broadcast %cst_29 : f32 to vector<8x64xf32>
    %40 = arith.addf %38, %39 : vector<8x64xf32>
    %41 = math.rsqrt %40 : vector<8x64xf32>
    %42 = arith.mulf %36, %41 : vector<8x64xf32>
    %43 = vector.broadcast %33 : vector<1x64xf32> to vector<8x64xf32>
    %44 = arith.mulf %42, %43 : vector<8x64xf32>
    %45 = vector.broadcast %34 : vector<1x64xf32> to vector<8x64xf32>
    %46 = arith.addf %44, %45 : vector<8x64xf32>
    %c0_30 = arith.constant 0 : index
    %c0_31 = arith.constant 0 : index
    %47 = vector.load %arg10[%c0_30, %c0_31] : memref<64x16xf32, #tpu.memory_space<vmem>>, vector<64x16xf32>
    %cst_32 = arith.constant dense<0.000000e+00> : vector<8x16xf32>
    %48 = tpu.matmul %46, %47, %cst_32 {dimension_numbers = #tpu.dot_dimension_numbers<[1], [0], [0], [1], [0, 0, 1, 1], [], []>} : vector<8x64xf32>, vector<64x16xf32>, vector<8x16xf32> -> vector<8x16xf32>
    %c0_33 = arith.constant 0 : index
    %c0_34 = arith.constant 0 : index
    %49 = vector.load %arg11[%c0_33, %c0_34] : memref<16x16xf32, #tpu.memory_space<vmem>>, vector<16x16xf32>
    %cst_35 = arith.constant dense<0.000000e+00> : vector<8x16xf32>
    %50 = tpu.matmul %48, %49, %cst_35 {dimension_numbers = #tpu.dot_dimension_numbers<[1], [0], [0], [1], [0, 0, 1, 1], [], []>} : vector<8x16xf32>, vector<16x16xf32>, vector<8x16xf32> -> vector<8x16xf32>
    %c0_36 = arith.constant 0 : index
    %c0_37 = arith.constant 0 : index
    %c0_38 = arith.constant 0 : index
    %51 = vector.load %arg3[%c0_36, %c0_37, %c0_38] : memref<1x8x8xf32, #tpu.memory_space<vmem>>, vector<1x8x8xf32>
    %52 = vector.shape_cast %51 : vector<1x8x8xf32> to vector<8x8xf32>
    %c0_39 = arith.constant 0 : index
    %c0_40 = arith.constant 0 : index
    %53 = vector.load %arg12[%c0_39, %c0_40] : memref<8x16xf32, #tpu.memory_space<vmem>>, vector<8x16xf32>
    %cst_41 = arith.constant dense<0.000000e+00> : vector<8x16xf32>
    %54 = tpu.matmul %52, %53, %cst_41 {dimension_numbers = #tpu.dot_dimension_numbers<[1], [0], [0], [1], [0, 0, 1, 1], [], []>} : vector<8x8xf32>, vector<8x16xf32>, vector<8x16xf32> -> vector<8x16xf32>
    %cst_42 = arith.constant dense<0.000000e+00> : vector<8x8xf32>
    %55 = tpu.matmul %50, %54, %cst_42 {dimension_numbers = #tpu.dot_dimension_numbers<[1], [1], [0], [0], [0, 0, 1, 0], [], []>} : vector<8x16xf32>, vector<8x16xf32>, vector<8x8xf32> -> vector<8x8xf32>
    %cst_43 = arith.constant dense<0xFF800000> : vector<8xf32>
    %56 = vector.multi_reduction <maximumf>, %55, %cst_43 [1] : vector<8x8xf32> to vector<8xf32>
    %57 = vector.shape_cast %56 : vector<8xf32> to vector<8x1xf32>
    %58 = vector.broadcast %57 : vector<8x1xf32> to vector<8x8xf32>
    %59 = arith.subf %55, %58 : vector<8x8xf32>
    %60 = math.exp %59 : vector<8x8xf32>
    %cst_44 = arith.constant dense<0.000000e+00> : vector<8xf32>
    %61 = vector.multi_reduction <add>, %60, %cst_44 [1] : vector<8x8xf32> to vector<8xf32>
    %62 = vector.shape_cast %61 : vector<8xf32> to vector<8x1xf32>
    %63 = tpu.reciprocal %62 {approx = true} : vector<8x1xf32> -> vector<8x1xf32>
    %64 = vector.broadcast %63 : vector<8x1xf32> to vector<8x8xf32>
    %65 = arith.mulf %60, %64 : vector<8x8xf32>
    %c0_45 = arith.constant 0 : index
    %c0_46 = arith.constant 0 : index
    %c0_47 = arith.constant 0 : index
    %66 = vector.load %arg21[%c0_45, %c0_46, %c0_47] : memref<1x8x8xf32, #tpu.memory_space<vmem>>, vector<1x8x8xf32>
    %67 = vector.shape_cast %66 : vector<1x8x8xf32> to vector<8x8xf32>
    %68 = vector.shape_cast %65 : vector<8x8xf32> to vector<1x8x8xf32>
    tpu.vector_store %arg21[%c0_45, %c0_46, %c0_47], %68 {strides = array<i32>} : memref<1x8x8xf32, #tpu.memory_space<vmem>>, vector<1x8x8xf32>,
    %c0_48 = arith.constant 0 : index
    %c0_49 = arith.constant 0 : index
    %c0_50 = arith.constant 0 : index
    %69 = vector.load %arg4[%c0_48, %c0_49, %c0_50] : memref<1x8x32xf32, #tpu.memory_space<vmem>>, vector<1x8x32xf32>
    %70 = vector.shape_cast %69 : vector<1x8x32xf32> to vector<8x32xf32>
    %c0_51 = arith.constant 0 : index
    %c0_52 = arith.constant 0 : index
    %71 = vector.load %arg13[%c0_51, %c0_52] : memref<32x64xf32, #tpu.memory_space<vmem>>, vector<32x64xf32>
    %cst_53 = arith.constant dense<0.000000e+00> : vector<8x64xf32>
    %72 = tpu.matmul %70, %71, %cst_53 {dimension_numbers = #tpu.dot_dimension_numbers<[1], [0], [0], [1], [0, 0, 1, 1], [], []>} : vector<8x32xf32>, vector<32x64xf32>, vector<8x64xf32> -> vector<8x64xf32>
    %cst_54 = arith.constant dense<0.000000e+00> : vector<8x64xf32>
    %73 = tpu.matmul %65, %72, %cst_54 {dimension_numbers = #tpu.dot_dimension_numbers<[1], [0], [0], [1], [0, 0, 1, 1], [], []>} : vector<8x8xf32>, vector<8x64xf32>, vector<8x64xf32> -> vector<8x64xf32>
    %c0_55 = arith.constant 0 : index
    %c0_56 = arith.constant 0 : index
    %74 = vector.load %arg14[%c0_55, %c0_56] : memref<64x128xf32, #tpu.memory_space<vmem>>, vector<64x128xf32>
    %cst_57 = arith.constant dense<0.000000e+00> : vector<8x128xf32>
    %75 = tpu.matmul %73, %74, %cst_57 {dimension_numbers = #tpu.dot_dimension_numbers<[1], [0], [0], [1], [0, 0, 1, 1], [], []>} : vector<8x64xf32>, vector<64x128xf32>, vector<8x128xf32> -> vector<8x128xf32>
    %cst_58 = arith.constant 0.000000e+00 : f32
    %76 = vector.broadcast %cst_58 : f32 to vector<8x128xf32>
    %77 = arith.cmpf ogt, %75, %76 : vector<8x128xf32>
    %cst_59 = arith.constant 2.000000e-01 : f32
    %78 = vector.broadcast %cst_59 : f32 to vector<8x128xf32>
    %79 = arith.mulf %78, %75 : vector<8x128xf32>
    %80 = arith.select %77, %75, %79 : vector<8x128xi1>, vector<8x128xf32>
    %c0_60 = arith.constant 0 : index
    %c0_61 = arith.constant 0 : index
    %81 = vector.load %arg16[%c0_60, %c0_61] : memref<128x128xf32, #tpu.memory_space<vmem>>, vector<128x128xf32>
    %c0_62 = arith.constant 0 : index
    %c0_63 = arith.constant 0 : index
    %82 = vector.load %arg15[%c0_62, %c0_63] : memref<2x128xf32, #tpu.memory_space<vmem>>, vector<1x128xf32>
    %c1_64 = arith.constant 1 : index
    %c0_65 = arith.constant 0 : index
    %83 = vector.load %arg15[%c1_64, %c0_65] : memref<2x128xf32, #tpu.memory_space<vmem>>, vector<1x128xf32>
    %cst_66 = arith.constant dense<0.000000e+00> : vector<8x128xf32>
    %84 = tpu.matmul %80, %81, %cst_66 {dimension_numbers = #tpu.dot_dimension_numbers<[1], [0], [0], [1], [0, 0, 1, 1], [], []>} : vector<8x128xf32>, vector<128x128xf32>, vector<8x128xf32> -> vector<8x128xf32>
    %85 = arith.subf %80, %84 : vector<8x128xf32>
    %86 = arith.mulf %85, %85 : vector<8x128xf32>
    %cst_67 = arith.constant dense<0.000000e+00> : vector<8x128xf32>
    %87 = tpu.matmul %86, %81, %cst_67 {dimension_numbers = #tpu.dot_dimension_numbers<[1], [0], [0], [1], [0, 0, 1, 1], [], []>} : vector<8x128xf32>, vector<128x128xf32>, vector<8x128xf32> -> vector<8x128xf32>
    %cst_68 = arith.constant 9.99999974E-6 : f32
    %88 = vector.broadcast %cst_68 : f32 to vector<8x128xf32>
    %89 = arith.addf %87, %88 : vector<8x128xf32>
    %90 = math.rsqrt %89 : vector<8x128xf32>
    %91 = arith.mulf %85, %90 : vector<8x128xf32>
    %92 = vector.broadcast %82 : vector<1x128xf32> to vector<8x128xf32>
    %93 = arith.mulf %91, %92 : vector<8x128xf32>
    %94 = vector.broadcast %83 : vector<1x128xf32> to vector<8x128xf32>
    %95 = arith.addf %93, %94 : vector<8x128xf32>
    %c0_69 = arith.constant 0 : index
    %c0_70 = arith.constant 0 : index
    %96 = vector.load %arg17[%c0_69, %c0_70] : memref<128x256xf32, #tpu.memory_space<vmem>>, vector<128x256xf32>
    %cst_71 = arith.constant dense<0.000000e+00> : vector<8x256xf32>
    %97 = tpu.matmul %95, %96, %cst_71 {dimension_numbers = #tpu.dot_dimension_numbers<[1], [0], [0], [1], [0, 0, 1, 1], [], []>} : vector<8x128xf32>, vector<128x256xf32>, vector<8x256xf32> -> vector<8x256xf32>
    %cst_72 = arith.constant 0.000000e+00 : f32
    %98 = vector.broadcast %cst_72 : f32 to vector<8x256xf32>
    %99 = arith.cmpf ogt, %97, %98 : vector<8x256xf32>
    %cst_73 = arith.constant 2.000000e-01 : f32
    %100 = vector.broadcast %cst_73 : f32 to vector<8x256xf32>
    %101 = arith.mulf %100, %97 : vector<8x256xf32>
    %102 = arith.select %99, %97, %101 : vector<8x256xi1>, vector<8x256xf32>
    %c0_74 = arith.constant 0 : index
    %c0_75 = arith.constant 0 : index
    %103 = vector.load %arg18[%c0_74, %c0_75] : memref<256x128xf32, #tpu.memory_space<vmem>>, vector<256x128xf32>
    %cst_76 = arith.constant dense<0.000000e+00> : vector<8x128xf32>
    %104 = tpu.matmul %102, %103, %cst_76 {dimension_numbers = #tpu.dot_dimension_numbers<[1], [0], [0], [1], [0, 0, 1, 1], [], []>} : vector<8x256xf32>, vector<256x128xf32>, vector<8x128xf32> -> vector<8x128xf32>
    %cst_77 = arith.constant 0.000000e+00 : f32
    %105 = vector.broadcast %cst_77 : f32 to vector<8x128xf32>
    %106 = arith.cmpf ogt, %104, %105 : vector<8x128xf32>
    %cst_78 = arith.constant 2.000000e-01 : f32
    %107 = vector.broadcast %cst_78 : f32 to vector<8x128xf32>
    %108 = arith.mulf %107, %104 : vector<8x128xf32>
    %109 = arith.select %106, %104, %108 : vector<8x128xi1>, vector<8x128xf32>
    %c0_79 = arith.constant 0 : index
    %c0_80 = arith.constant 0 : index
    %c0_81 = arith.constant 0 : index
    %110 = vector.load %arg19[%c0_79, %c0_80, %c0_81] : memref<1x8x128xf32, #tpu.memory_space<vmem>>, vector<1x8x128xf32>
    %111 = vector.shape_cast %110 : vector<1x8x128xf32> to vector<8x128xf32>
    %112 = vector.shape_cast %109 : vector<8x128xf32> to vector<1x8x128xf32>
    tpu.vector_store %arg19[%c0_79, %c0_80, %c0_81], %112 {strides = array<i32>} : memref<1x8x128xf32, #tpu.memory_space<vmem>>, vector<1x8x128xf32>,
    return
  }
  func.func @transform_0(%arg0: i32) -> (i32, i32, i32) {
    %c0_i32 = arith.constant 0 : i32
    %c0_i32_0 = arith.constant 0 : i32
    %c0_i32_1 = arith.constant 0 : i32
    return %arg0, %c0_i32, %c0_i32_0 : i32, i32, i32
  }
  func.func @transform_1(%arg0: i32) -> (i32, i32, i32) {
    %c0_i32 = arith.constant 0 : i32
    %c0_i32_0 = arith.constant 0 : i32
    %c0_i32_1 = arith.constant 0 : i32
    return %arg0, %c0_i32, %c0_i32_0 : i32, i32, i32
  }
  func.func @transform_2(%arg0: i32) -> (i32, i32, i32) {
    %c0_i32 = arith.constant 0 : i32
    %c0_i32_0 = arith.constant 0 : i32
    %c0_i32_1 = arith.constant 0 : i32
    return %arg0, %c0_i32, %c0_i32_0 : i32, i32, i32
  }
  func.func @transform_3(%arg0: i32) -> (i32, i32, i32) {
    %c0_i32 = arith.constant 0 : i32
    %c0_i32_0 = arith.constant 0 : i32
    %c0_i32_1 = arith.constant 0 : i32
    return %arg0, %c0_i32, %c0_i32_0 : i32, i32, i32
  }
  func.func @transform_4(%arg0: i32) -> (i32, i32) {
    %c0_i32 = arith.constant 0 : i32
    %c0_i32_0 = arith.constant 0 : i32
    %c0_i32_1 = arith.constant 0 : i32
    return %c0_i32, %c0_i32_0 : i32, i32
  }
  func.func @transform_5(%arg0: i32) -> (i32, i32) {
    %c0_i32 = arith.constant 0 : i32
    %c0_i32_0 = arith.constant 0 : i32
    %c0_i32_1 = arith.constant 0 : i32
    return %c0_i32, %c0_i32_0 : i32, i32
  }
  func.func @transform_6(%arg0: i32) -> (i32, i32) {
    %c0_i32 = arith.constant 0 : i32
    %c0_i32_0 = arith.constant 0 : i32
    %c0_i32_1 = arith.constant 0 : i32
    return %c0_i32, %c0_i32_0 : i32, i32
  }
  func.func @transform_7(%arg0: i32) -> (i32, i32) {
    %c0_i32 = arith.constant 0 : i32
    %c0_i32_0 = arith.constant 0 : i32
    %c0_i32_1 = arith.constant 0 : i32
    return %c0_i32, %c0_i32_0 : i32, i32
  }
  func.func @transform_8(%arg0: i32) -> (i32, i32) {
    %c0_i32 = arith.constant 0 : i32
    %c0_i32_0 = arith.constant 0 : i32
    %c0_i32_1 = arith.constant 0 : i32
    return %c0_i32, %c0_i32_0 : i32, i32
  }
  func.func @transform_9(%arg0: i32) -> (i32, i32) {
    %c0_i32 = arith.constant 0 : i32
    %c0_i32_0 = arith.constant 0 : i32
    %c0_i32_1 = arith.constant 0 : i32
    return %c0_i32, %c0_i32_0 : i32, i32
  }
  func.func @transform_10(%arg0: i32) -> (i32, i32) {
    %c0_i32 = arith.constant 0 : i32
    %c0_i32_0 = arith.constant 0 : i32
    %c0_i32_1 = arith.constant 0 : i32
    return %c0_i32, %c0_i32_0 : i32, i32
  }
  func.func @transform_11(%arg0: i32) -> (i32, i32) {
    %c0_i32 = arith.constant 0 : i32
    %c0_i32_0 = arith.constant 0 : i32
    %c0_i32_1 = arith.constant 0 : i32
    return %c0_i32, %c0_i32_0 : i32, i32
  }
  func.func @transform_12(%arg0: i32) -> (i32, i32) {
    %c0_i32 = arith.constant 0 : i32
    %c0_i32_0 = arith.constant 0 : i32
    %c0_i32_1 = arith.constant 0 : i32
    return %c0_i32, %c0_i32_0 : i32, i32
  }
  func.func @transform_13(%arg0: i32) -> (i32, i32) {
    %c0_i32 = arith.constant 0 : i32
    %c0_i32_0 = arith.constant 0 : i32
    %c0_i32_1 = arith.constant 0 : i32
    return %c0_i32, %c0_i32_0 : i32, i32
  }
  func.func @transform_14(%arg0: i32) -> (i32, i32) {
    %c0_i32 = arith.constant 0 : i32
    %c0_i32_0 = arith.constant 0 : i32
    %c0_i32_1 = arith.constant 0 : i32
    return %c0_i32, %c0_i32_0 : i32, i32
  }
  func.func @transform_15(%arg0: i32) -> (i32, i32) {
    %c0_i32 = arith.constant 0 : i32
    %c0_i32_0 = arith.constant 0 : i32
    %c0_i32_1 = arith.constant 0 : i32
    return %c0_i32, %c0_i32_0 : i32, i32
  }
  func.func @transform_16(%arg0: i32) -> (i32, i32) {
    %c0_i32 = arith.constant 0 : i32
    %c0_i32_0 = arith.constant 0 : i32
    %c0_i32_1 = arith.constant 0 : i32
    return %c0_i32, %c0_i32_0 : i32, i32
  }
  func.func @transform_17(%arg0: i32) -> (i32, i32) {
    %c0_i32 = arith.constant 0 : i32
    %c0_i32_0 = arith.constant 0 : i32
    %c0_i32_1 = arith.constant 0 : i32
    return %c0_i32, %c0_i32_0 : i32, i32
  }
  func.func @transform_18(%arg0: i32) -> (i32, i32, i32) {
    %c0_i32 = arith.constant 0 : i32
    %c0_i32_0 = arith.constant 0 : i32
    %c0_i32_1 = arith.constant 0 : i32
    return %arg0, %c0_i32, %c0_i32_0 : i32, i32, i32
  }
  func.func @transform_19(%arg0: i32) -> (i32, i32, i32) {
    %c0_i32 = arith.constant 0 : i32
    %c0_i32_0 = arith.constant 0 : i32
    %c0_i32_1 = arith.constant 0 : i32
    return %arg0, %c0_i32, %c0_i32_0 : i32, i32, i32
  }
  func.func @transform_20(%arg0: i32) -> (i32, i32, i32) {
    %c0_i32 = arith.constant 0 : i32
    %c0_i32_0 = arith.constant 0 : i32
    %c0_i32_1 = arith.constant 0 : i32
    return %arg0, %c0_i32, %c0_i32_0 : i32, i32, i32
  }
}

</mosaic_0001>

<bundles_post_ra>
// kernel: tpu_custom_call.1
= control target key start
LH: loop header
LB: loop body
LE: loop exit
PB: predicated region body
PF: predicated region fallthrough
CT: control target
= control target key end

     0   :  { %s3258_s0 = inlined_call_operand.vmem [shape: f32[2,8,8], index: 0, kind: input, shape index: {}]   ;;  %s3259_s1 = inlined_call_operand.hbm [shape: f32[2,8,32], index: 1, kind: input, shape index: {}]   ;;  %s3260_s2 = inlined_call_operand.hbm [shape: f32[2,8,8], index: 2, kind: input, shape index: {}]   ;;  %s3261_s3 = inlined_call_operand.hbm [shape: f32[2,8,32], index: 3, kind: input, shape index: {}]   ;;  %s3262_s4 = inlined_call_operand.hbm [shape: f32[8,32], index: 4, kind: input, shape index: {}]   ;;  %s3263_s5 = inlined_call_operand.hbm [shape: f32[32,64], index: 5, kind: input, shape index: {}]   ;;  %s3264_s6 = inlined_call_operand.vmem [shape: f32[64,64], index: 6, kind: input, shape index: {}]   ;;  %s3265_s7 = inlined_call_operand.hbm [shape: f32[2,64], index: 7, kind: input, shape index: {}]   ;;  %s3266_s8 = inlined_call_operand.hbm [shape: f32[64,64], index: 8, kind: input, shape index: {}]   ;;  %s3267_s9 = inlined_call_operand.vmem [shape: f32[64,16], index: 9, kind: input, shape index: {}]   ;;  %s3268_s10 = inlined_call_operand.hbm [shape: f32[16,16], index: 10, kind: input, shape index: {}]   ;;  %s3269_s11 = inlined_call_operand.vmem [shape: f32[8,16], index: 11, kind: input, shape index: {}]   ;;  %s3270_s12 = inlined_call_operand.hbm [shape: f32[32,64], index: 12, kind: input, shape index: {}]   ;;  %s3271_s13 = inlined_call_operand.hbm [shape: f32[64,128], index: 13, kind: input, shape index: {}]   ;;  %s3272_s14 = inlined_call_operand.vmem [shape: f32[2,128], index: 14, kind: input, shape index: {}]   ;;  %s3273_s15 = inlined_call_operand.hbm [shape: f32[128,128], index: 15, kind: input, shape index: {}]   ;;  %s3274_s16 = inlined_call_operand.hbm [shape: f32[128,256], index: 16, kind: input, shape index: {}]   ;;  %s3275_s17 = inlined_call_operand.hbm [shape: f32[256,128], index: 17, kind: input, shape index: {}]   ;;  %s3276_s18 = inlined_call_operand.hbm [shape: f32[2,8,128], index: 18, kind: output, shape index: {0}]   ;;  %s3277_s19 = inlined_call_operand.hbm [shape: f32[2,8,8], index: 19, kind: output, shape index: {1}]   ;;  %s3278_s20 = inlined_call_operand.hbm [shape: f32[2,8,8], index: 20, kind: output, shape index: {2}]  }
   0x1   :  { %3301 = sst [smem:[#allocation42_spill]] %s3258_s0 }
   0x2   :  { %3302 = sst [smem:[#allocation43_spill]] %s3259_s1 }
   0x3   :  { %3303 = sst [smem:[#allocation44_spill]] %s3260_s2 }
   0x4   :  { %3304 = sst [smem:[#allocation45_spill]] %s3261_s3 }
   0x5   :  { %3305 = sst [smem:[#allocation46_spill]] %s3262_s4 }
   0x6   :  { %3306 = sst [smem:[#allocation47_spill]] %s3263_s5 }
   0x7   :  { %3307 = sst [smem:[#allocation48_spill]] %s3265_s7 }
   0x8   :  { %3308 = sst [smem:[#allocation49_spill]] %s3266_s8 }
   0x9   :  { %3309 = sst [smem:[#allocation50_spill]] %s3268_s10 }
   0xa   :  { %3310 = sst [smem:[#allocation51_spill]] %s3269_s11 }
   0xb   :  { %3311 = sst [smem:[#allocation52_spill]] %s3271_s13 }
   0xc   :  { %3312 = sst [smem:[#allocation53_spill]] %s3272_s14 }
   0xd   :  { %3313 = sst [smem:[#allocation54_spill]] %s3274_s16 }
   0xe   :  { %3314 = sst [smem:[#allocation55_spill]] %s3276_s18 }
   0xf   :  { %3315 = sst [smem:[#allocation56_spill]] %s3277_s19 }
  0x10   :  { %3316 = sst [smem:[#allocation57_spill]] %s3278_s20 }
  0x11   :  { %26 = vsyncpa [#allocation3], 0 }
  0x12   :  { %28 = vsyncpa [#allocation3 + $0x1], 0 }
  0x13   :  { %29 = vsyncpa [#allocation6], 0 }
  0x14   :  { %31 = vsyncpa [#allocation6 + $0x1], 0 }
  0x15   :  { %32 = vsyncpa [#allocation9], 0 }
  0x16   :  { %33 = vsyncpa [#allocation12], 0 }
  0x17   :  { %34 = vsyncpa [#allocation15], 0 }
  0x18   :  { %35 = vsyncpa [#allocation18], 0 }
  0x19   :  { %36 = vsyncpa [#allocation21], 0 }
  0x1a   :  { %37 = vsyncpa [#allocation4], 0 }
  0x1b   :  { %39 = vsyncpa [#allocation4 + $0x1], 0 }
  0x1c   :  { %40 = vsyncpa [#allocation25], 0 }
  0x1d   :  { %42 = vsyncpa [#allocation25 + $0x1], 0  ;;  %s2825_s1 = smov 0   ;;  %s2827_s22 = smov 0  }
  0x1e   :  { %s2829_s23 = smov 0   ;;  %s2831_s24 = smov 0  }
  0x1f LB: > { %3317 = sst [smem:[#allocation36_spill]] %s2691_s1  ;;  %s2849_s27 = sadd.s32 4294967295, %s2703_s24   ;;  %s2703_s24 = sphi %s2831_s24, %s3364_s24   ;;  %s2699_s23 = sphi %s2829_s23, %s3368_s23   ;;  %s2695_s22 = sphi %s2827_s22, %s3367_s22   ;;  %s2691_s1 = sphi %s2825_s1, %s3366_s1  }
  0x20   : > { %3318 = sst [smem:[#allocation37_spill]] %s2703_s24  ;;  %p1915_p0 = scmp.ge.s32.totalorder %s2703_s24, 1 }
  0x21   : > { %s3319_s3 = sld [smem:[#allocation46_spill]]  ;;  %p3300_p1 = scmp.eq.s32.totalorder %s2849_s27, 0 }
  0x22   : > { %p529_p2 = scmp.lt.s32.totalorder %s2703_s24, 3  ;;  %s2705_s4 = smov [#allocation8]  }
  0x23   : > { %s543_s29 = sshll.u32 %s2705_s4, 4  ;;  %s3321_s7 = sld [smem:[#allocation48_spill]]  ;;  %s544_s29 = int_to_ptr.vmem [resolvable:$true] %s543_s29 }
  0x24   : > { %p2854_p3 = pnand %p1915_p0, %p529_p2  ;;  %s2706_s25 = smov [#allocation11]  }
  0x25   : > { %s3323_s10 = sld [smem:[#allocation50_spill]]  ;;  %s2707_s0 = smov [#allocation14]  }
  0x26   : > { %p2027_p5 = pneg %p2854_p3  ;;  %s3324_s13 = sld [smem:[#allocation52_spill]] }
  0x27   : > { %s541_s26 = sshll.u32 %s3319_s3, 4  ;;  %s572_s3 = sshll.u32 %s2706_s25, 4  ;;  %s542_s26 = int_to_ptr.hbm [resolvable:$true] %s541_s26  ;;  %s573_s3 = int_to_ptr.vmem [resolvable:$true] %s572_s3 }
  0x28   : > { %p2866_p6 = pnand %p2027_p5, %p3300_p1  ;;  %s3287_s25 = smov 128  }
  0x29   : > { %s570_s21 = sshll.u32 %s3321_s7, 4  ;;  %s600_s7 = sshll.u32 %s2707_s0, 4  ;;  %s571_s21 = int_to_ptr.hbm [resolvable:$true] %s570_s21  ;;  %s601_s7 = int_to_ptr.vmem [resolvable:$true] %s600_s7 }
  0x2a   : > { %2030 = dma.hbm_to_vmem [thread:$0]  (!%p2866_p6), %s542_s26, 128, %s544_s29, [#allocation9]  }
  0x2b   : > { %2036 = dma.hbm_to_vmem [thread:$0]  (!%p2866_p6), %s571_s21, 32, %s573_s3, [#allocation12]  }
  0x2c   : > { %s598_s30 = sshll.u32 %s3323_s10, 4  ;;  %s629_s14 = sshll.u32 %s3324_s13, 4  ;;  %s599_s30 = int_to_ptr.hbm [resolvable:$true] %s598_s30  ;;  %s630_s14 = int_to_ptr.hbm [resolvable:$true] %s629_s14 }
  0x2d   : > { %s3289_s11 = smov 8   ;;  %s2710_s18 = smov [#allocation17]  }
  0x2e   : > { %2042 = dma.hbm_to_vmem [thread:$0]  (!%p2866_p6), %s599_s30, 256, %s601_s7, [#allocation15], %s3287_s25, %s3287_s25, %s3289_s11  }
  0x2f   : > { %s631_s26 = sshll.u32 %s2710_s18, 4  ;;  %s3325_s16 = sld [smem:[#allocation54_spill]]  ;;  %s632_s26 = int_to_ptr.vmem [resolvable:$true] %s631_s26 }
  0x30   : > { %2048 = dma.hbm_to_vmem [thread:$0]  (!%p2866_p6), %s630_s14, 1024, %s632_s26, [#allocation18], %s3287_s25, %s3287_s25, %s3289_s11  }
  0x31   : > { %s2711_s7 = smov [#allocation20]   ;;  %s2712_s3 = smov 256  }
  0x32   : > { %s662_s21 = sshll.u32 %s2711_s7, 4  ;;  %s2713_s4 = smov 16   ;;  %s663_s21 = int_to_ptr.vmem [resolvable:$true] %s662_s21 }
  0x33   : > { %s3286_s30 = sadd.s32 4294967294, %s2703_s24   ;;  %s2897_s0 = sadd.s32 1, %s2703_s24  }
  0x34   : > { %3326 = sst [smem:[#allocation38_spill]] %s2897_s0  ;;  %s81_s18 = sadd.s32 1, %s2699_s23 }
  0x35   : > { %s660_s20 = sshll.u32 %s3325_s16, 4  ;;  %s78_s14 = ssub.s32 %s2703_s24, %s2897_s0  ;;  %s661_s20 = int_to_ptr.hbm [resolvable:$true] %s660_s20 }
  0x36   : > { %2054 = dma.hbm_to_vmem [thread:$0]  (!%p2866_p6), %s661_s20, 4096, %s663_s21, [#allocation21], %s2712_s3, %s2712_s3, %s2713_s4  }
  0x37   : > { %p88_p7 = scmp.ne.s32.totalorder %s2699_s23, %s2695_s22  ;;  %p79_p8 = scmp.eq.s32.totalorder %s78_s14, 0 }
  0x38   : > { %p89_p9 = scmp.eq.s32.totalorder %s2703_s24, 0  ;;  %p94_p10 = scmp.ne.s32.totalorder %s2695_s22, %s2691_s1 }
  0x39   : > { %p464_p11 = scmp.eq.s32.totalorder %s2849_s27, 1  ;;  %p470_p2 = scmp.eq.s32.totalorder %s3286_s30, 1 }
  0x3a   : > { %s2909_s26 = scalar_select %p79_p8, %s2699_s23, %s81_s18  }
  0x3b   : > { %p90_p12 = por %p89_p9, %p88_p7  ;;  %p2913_p13 = por %p3300_p1, %p94_p10 }
  0x3c   : > { %3327 = sst [smem:[#allocation39_spill]] %s2909_s26  ;;  %p2917_p0 = por %p464_p11, %p88_p7 }
  0x3d   : > { %p2088_p5 = scmp.lt.s32.totalorder %s2703_s24, 2  ;;  %s3291_s20 = sand.u32 1, %s2699_s23  }
  0x3e   : > { %s3329_s19 = scalar_select %p2917_p0, 1, 0 }
  0x3f   : > { %p2925_p4 = por %p470_p2, %p94_p10  ;;  %s2931_s21 = sshll.u32 %s3291_s20, 3 }
  0x40   : > { %3330 = sst [smem:[#allocation40_spill]] %s3329_s19  ;;  %s2934_s3 = sshll.u32 %s2703_s24, 3 }
  0x41   : > { %s3331_s7 = scalar_select %p2925_p4, 1, 0 }
  0x42   : > { %p2936_p8 = pnand %p2088_p5, %p90_p12  ;;  %s716_s18 = sand.u32 1, %s2703_s24  }
  0x43   : > { %3332 = sst [smem:[#allocation41_spill]] %s3331_s7  ;;  %s720_s10 = scalar_lea.vmem [#allocation5], %s2931_s21 }
  0x44   : > { %s3334_s25 = sld [smem:[#allocation44_spill]]  ;;  %s728_s13 = sshll.u32 %s720_s10, 4  ;;  %s729_s13 = int_to_ptr.vmem [resolvable:$true] %s728_s13 }
  0x45   : > { %s3335_s5 = sld [smem:[#allocation47_spill]]  ;;  %s2949_s7 = scalar_lea.sflag [#allocation6], %s716_s18 }
  0x46   : > { %p2317_p9 = pneg %p2936_p8 }
  0x4a   : > { %s724_s11 = scalar_lea.hbm %s3334_s25, %s2934_s3  ;;  %s2320_s30 = scalar_lea.hbm %s3334_s25, 16 }
  0x4b   : > { %s726_s16 = sshll.u32 %s724_s11, 4  ;;  %s552_s0 = sshll.u32 %s3335_s5, 4  ;;  %s727_s16 = int_to_ptr.hbm [resolvable:$true] %s726_s16  ;;  %s553_s0 = int_to_ptr.hbm [resolvable:$true] %s552_s0 }
  0x4c   : > { %s2313_s1 = sshra.s32 %s727_s16, 4  ;;  %s2314_s1 = int_to_ptr.hbm [resolvable:$true] %s2313_s1 }
  0x4d   : > { %s2315_s19 = scalar_lea.hbm %s2314_s1, 8  ;;  %p2321_p12 = scmp.lt.s32.totalorder %s2314_s1, %s3334_s25 }
  0x4e   : > { %p2316_p7 = scmp.ne.s32.totalorder %s2314_s1, %s2315_s19  ;;  %p2322_p2 = scmp.lt.s32.totalorder %s2320_s30, %s2315_s19 }
  0x50   : > { %p2318_p10 = pnand %p2317_p9, %p2316_p7  ;;  %p2323_p5 = por %p2322_p2, %p2321_p12 }
  0x52   : > { %p2319_p11 = pneg %p2318_p10 }
  0x54   : > { %p2324_p1 = pnand %p2323_p5, %p2319_p11 }
  0x56   : > { %2327 = shalt.err (!%p2324_p1)
}
  0x57   : > { %2064 = dma.hbm_to_vmem [thread:$0]  (!%p2936_p8), %s727_s16, 128, %s729_s13, %s2949_s7  }
  0x58   : > { %s2714_s26 = smov [#allocation10]   ;;  %s3336_s8 = sld [smem:[#allocation49_spill]] }
  0x59   : > { %s554_s20 = sshll.u32 %s2714_s26, 4  ;;  %s3337_s1 = smov 8   ;;  %s555_s20 = int_to_ptr.vmem [resolvable:$true] %s554_s20 }
  0x5a   : > { %s3338_s24 = smov 128   ;;  %s615_s14 = sshll.u32 %s3270_s12, 4  ;;  %s616_s14 = int_to_ptr.hbm [resolvable:$true] %s615_s14 }
  0x5b   : > { %2033 = dma.hbm_to_vmem [thread:$0]  (!%p2866_p6), %s553_s0, 512, %s555_s20, [#allocation9], %s3338_s24, %s3338_s24, %s3337_s1  }
  0x5c   : > { %s2715_s13 = smov [#allocation13]   ;;  %s2716_s26 = smov [#allocation16]  }
  0x5d   : > { %s583_s16 = sshll.u32 %s2715_s13, 4  ;;  %s617_s18 = sshll.u32 %s2716_s26, 4  ;;  %s584_s16 = int_to_ptr.vmem [resolvable:$true] %s583_s16  ;;  %s618_s18 = int_to_ptr.vmem [resolvable:$true] %s617_s18 }
  0x5e   : > { %s581_s11 = sshll.u32 %s3336_s8, 4  ;;  %s646_s20 = sshll.u32 %s3273_s15, 4  ;;  %s582_s11 = int_to_ptr.hbm [resolvable:$true] %s581_s11  ;;  %s647_s20 = int_to_ptr.hbm [resolvable:$true] %s646_s20 }
  0x5f   : > { %2039 = dma.hbm_to_vmem [thread:$0]  (!%p2866_p6), %s582_s11, 1024, %s584_s16, [#allocation12], %s3338_s24, %s3338_s24, %s3337_s1  }
  0x60   : > { %2045 = dma.hbm_to_vmem [thread:$0]  (!%p2866_p6), %s616_s14, 512, %s618_s18, [#allocation15], %s3338_s24, %s3338_s24, %s3337_s1  }
  0x61   : > { %s674_s11 = sshll.u32 %s3275_s17, 4  ;;  %s2717_s13 = smov [#allocation19]   ;;  %s675_s11 = int_to_ptr.hbm [resolvable:$true] %s674_s11 }
  0x62   : > { %s648_s16 = sshll.u32 %s2717_s13, 4  ;;  %s2718_s26 = smov [#allocation22]   ;;  %s649_s16 = int_to_ptr.vmem [resolvable:$true] %s648_s16 }
  0x63   : > { %2051 = dma.hbm_to_vmem [thread:$0]  (!%p2866_p6), %s647_s20, 2048, %s649_s16, [#allocation18], %s3338_s24, %s3338_s24, %s3337_s1  }
  0x64   : > { %s676_s10 = sshll.u32 %s2718_s26, 4  ;;  %s3339_s0 = sld [smem:[#allocation43_spill]]  ;;  %s677_s10 = int_to_ptr.vmem [resolvable:$true] %s676_s10 }
  0x65   : > { %2057 = dma.hbm_to_vmem [thread:$0]  (!%p2866_p6), %s675_s11, 4096, %s677_s10, [#allocation21], %s3338_s24, %s3338_s24, %s3337_s1  }
  0x66   : > { %s701_s30 = scalar_lea.vmem [#allocation2], %s2931_s21  ;;  %s3340_s8 = sand.u32 1, %s2699_s23  }
  0x67   : > { %s709_s13 = sshll.u32 %s701_s30, 4  ;;  %s698_s20 = scalar_lea.sflag [#allocation3], %s3340_s8  ;;  %s710_s13 = int_to_ptr.vmem [resolvable:$true] %s709_s13 }
  0x6a   : > { %s705_s19 = scalar_lea.hbm %s3339_s0, %s2934_s3  ;;  %s2500_s24 = scalar_lea.hbm %s3339_s0, 16 }
  0x6b   : > { %s707_s5 = sshll.u32 %s705_s19, 4  ;;  %s708_s5 = int_to_ptr.hbm [resolvable:$true] %s707_s5 }
  0x6c   : > { %s2493_s16 = sshra.s32 %s708_s5, 4  ;;  %s2494_s16 = int_to_ptr.hbm [resolvable:$true] %s2493_s16 }
  0x6d   : > { %s2495_s26 = scalar_lea.hbm %s2494_s16, 8  ;;  %p2501_p6 = scmp.lt.s32.totalorder %s2494_s16, %s3339_s0 }
  0x6e   : > { %p2496_p1 = scmp.ne.s32.totalorder %s2494_s16, %s2495_s26  ;;  %p2502_p11 = scmp.lt.s32.totalorder %s2500_s24, %s2495_s26 }
  0x70   : > { %p2498_p7 = pnand %p2496_p1, %p2317_p9  ;;  %p2503_p12 = por %p2502_p11, %p2501_p6 }
  0x72   : > { %p2499_p10 = pneg %p2498_p7 }
  0x74   : > { %p2504_p2 = pnand %p2503_p12, %p2499_p10 }
  0x76   : > { %2507 = shalt.err (!%p2504_p2)
}
  0x77   : > { %2061 = dma.hbm_to_vmem [thread:$0]  (!%p2936_p8), %s708_s5, 128, %s710_s13, %s698_s20  }
  0x78   : > { %s3341_s18 = sld [smem:[#allocation45_spill]]  ;;  %s739_s30 = scalar_lea.vmem [#allocation7], %s2931_s21 }
  0x79   : > { %s747_s2 = sshll.u32 %s739_s30, 4  ;;  %s748_s2 = int_to_ptr.vmem [resolvable:$true] %s747_s2 }
  0x7e   : > { %s743_s19 = scalar_lea.hbm %s3341_s18, %s2934_s3  ;;  %s2530_s5 = scalar_lea.hbm %s3341_s18, 16 }
  0x7f   : > { %s745_s1 = sshll.u32 %s743_s19, 4  ;;  %s746_s1 = int_to_ptr.hbm [resolvable:$true] %s745_s1 }
  0x80   : > { %s2523_s16 = sshra.s32 %s746_s1, 4  ;;  %s2524_s16 = int_to_ptr.hbm [resolvable:$true] %s2523_s16 }
  0x81   : > { %s2525_s26 = scalar_lea.hbm %s2524_s16, 8  ;;  %p2531_p10 = scmp.lt.s32.totalorder %s2524_s16, %s3341_s18 }
  0x82   : > { %p2526_p5 = scmp.ne.s32.totalorder %s2524_s16, %s2525_s26  ;;  %p2532_p6 = scmp.lt.s32.totalorder %s2530_s5, %s2525_s26 }
  0x84   : > { %p2528_p1 = pnand %p2526_p5, %p2317_p9  ;;  %p2533_p11 = por %p2532_p6, %p2531_p10 }
  0x86   : > { %p2529_p7 = pneg %p2528_p1 }
  0x88   : > { %p2534_p12 = pnand %p2533_p11, %p2529_p7 }
  0x8a   : > { %2537 = shalt.err (!%p2534_p12)
}
  0x8b   : > { %2067 = dma.hbm_to_vmem [thread:$0]  (!%p2936_p8), %s746_s1, 128, %s748_s2, %s2949_s7  }
  0x8c   : > { %756 = sbr.rel (%p2854_p3) target bundleno = 2808 (0xaf8), region = 92  ;;  %s3040_s21 = sand.u32 (!%p2854_p3), 1, %s2695_s22  }
  0x8d   : > { %s3043_s3 = sshll.u32 (!%p2854_p3), %s3040_s21, 3  ;;  %s759_s10 = scalar_lea.sflag (!%p2854_p3), [#allocation3], %s3040_s21 }
  0x8e   : > { %s762_s8 = scalar_lea.vmem (!%p2854_p3), [#allocation2], %s3043_s3 }
  0x91   : > { %2654 = dma.done.wait (%p2913_p13), %s759_s10, 128  }
  0x92   : > { %2656 = vsyncadd (%p2913_p13), %s759_s10, 4294967168  ;;  %s768_s28 = sand.u32 1, %s2849_s27   ;;  %s772_s4 = scalar_lea.vmem [#allocation5], %s3043_s3 }
  0x93   : > { %s769_s7 = scalar_lea.sflag [#allocation6], %s768_s28 }
  0x94   : > { %2658 = dma.done.wait (%p2913_p13), %s769_s7, 256  }
  0x95   : > { %2660 = vsyncadd (%p2913_p13), %s769_s7, 4294967040  ;;  %s782_s14 = scalar_lea.vmem [#allocation7], %s3043_s3  ;;  %p3342_p3 = scmp.eq.s32.totalorder %s2849_s27, 0 }
  0x97   : > { %2662 = dma.done.wait (%p3342_p3), [#allocation9], 640   ;;  %p3343_p8 = pmov %p3342_p3 }
  0x98   : > { %p3344_p9 = pmov %p3342_p3 }
  0x99   : > { %2664 = vsyncadd (%p3343_p8), [#allocation9], 4294966656 }
  0x9a   : > { %2666 = dma.done.wait (%p3344_p9), [#allocation12], 1056   ;;  %p3345_p2 = pmov %p3342_p3 }
  0x9c   : > { %2668 = vsyncadd (%p3345_p2), [#allocation12], 4294966240  ;;  %p3346_p5 = pmov %p3345_p2 }
  0x9d   : > { %p3347_p1 = pmov %p3345_p2 }
  0x9e   : > { %2670 = dma.done.wait (%p3346_p5), [#allocation15], 768  }
  0x9f   : > { %2672 = vsyncadd (%p3347_p1), [#allocation15], 4294966528  ;;  %p3348_p13 = pmov %p3347_p1 }
  0xa0   : > { %p3349_p7 = pmov %p3347_p1 }
  0xa1   : > { %2674 = dma.done.wait (%p3348_p13), [#allocation18], 3072  }
  0xa2   : > { %2676 = vsyncadd (%p3349_p7), [#allocation18], 4294964224  ;;  %p3350_p10 = pmov %p3347_p1 }
  0xa3   : > { %p3351_p6 = pmov %p3347_p1 }
  0xa4   : > { %2678 = dma.done.wait (%p3350_p10), [#allocation21], 8192  }
  0xa5   : > { %2680 = vsyncadd (%p3351_p6), [#allocation21], 4294959104  ;;  %p914_p11 = scmp.lt.s32.totalorder %s2849_s27, 1  ;;  %s3352_s1 = sld [smem:[#allocation42_spill]]  ;;  %vm920_vm0 = vcmask 64512   ;;  %v919_v0 = vld [vmem:[#allocation8] sm:$0xff] }
  0xa6   : > { %939 = vmatpush.msra.mxu0 %v919_v0  ;;  %s2719_s26 = smov 112   ;;  %vm947_vm1 = vcmask 130048   ;;  %v988_v4 = vld [vmem:[#allocation10 + $0x18] sm:$0xff]  ;;  %v987_v5 = vld [vmem:[#allocation10 + $0x10] sm:$0xff]  ;;  %v986_v8 = vld [vmem:[#allocation10 + $0x8] sm:$0xff]  ;;  %vm989_vm2 = vcmask 261120  }
  0xa7   : > { %s915_s29 = scalar_select %p914_p11, %s2849_s27, 1  ;;  %1005 = vmatpush.msra.mxu2 %v988_v4  ;;  %v985_v9 = vld [vmem:[#allocation10] sm:$0xff]  ;;  %v984_v10 = vld [vmem:[%s762_s8] sm:$0xff]  ;;  %v1042_v18 = vld [vmem:[%s3264_s6 + $0x30] sm:$0xff]  ;;  %vm1044_vm3 = vcmask 523264  }
  0xa8   : > { %v1043_v17 = vld [vmem:[%s3264_s6 + $0x38] sm:$0xff]  ;;  %v1041_v19 = vld [vmem:[%s3264_s6 + $0x28] sm:$0xff]  ;;  %v1040_v20 = vld [vmem:[%s3264_s6 + $0x20] sm:$0xff]  ;;  %s3353_s8 = sld [smem:[#allocation51_spill]]  ;;  %s3192_s10 = scalar_lea.sflag [#allocation25], %s768_s28 }
  0xa9   : > { %s1950_s19 = sshll.u32 %s915_s29, 3  ;;  %1006 = vmatpush.msra.mxu2 %v987_v5  ;;  %1056 = vmatpush.msrb.mxu0 %v1043_v17  ;;  %v1039_v21 = vld [vmem:[%s3264_s6 + $0x18] sm:$0xff]  ;;  %v1038_v22 = vld [vmem:[%s3264_s6 + $0x10] sm:$0xff]  ;;  %v1037_v23 = vld [vmem:[%s3264_s6 + $0x8] sm:$0xff]  ;;  %s3354_s29 = sld [smem:[#allocation53_spill]] }
  0xaa   : > { %v1036_v27 = vld [vmem:[%s3264_s6] sm:$0xff]  ;;  %v1078_v28 = vld [vmem:[#allocation13 + $0x38] sm:$0xff]  ;;  %v1077_v29 = vld [vmem:[#allocation13 + $0x30] sm:$0xff]  ;;  %s3356_s11 = sld [smem:[#allocation56_spill]] }
  0xab   : > { %s917_s16 = scalar_lea.vmem %s3352_s1, %s1950_s19  ;;  %1007 = vmatpush.msra.mxu2 %v986_v8  ;;  %1057 = vmatpush.msrb.mxu0 %v1042_v18  ;;  %v1076_v30 = vld [vmem:[#allocation13 + $0x28] sm:$0xff]  ;;  %v1075_v31 = vld [vmem:[#allocation13 + $0x20] sm:$0xff]  ;;  %v1074_v32 = vld [vmem:[#allocation13 + $0x18] sm:$0xff]  ;;  %s3182_s1 = sshll.u32 %s2849_s27, 3 }
  0xac   : > { %v918_v1 = vld [vmem:[%s917_s16] sm:$0xff]  ;;  %v1073_v33 = vld [vmem:[#allocation13 + $0x10] sm:$0xff]  ;;  %v1151_v43 = vld [vmem:[%s3267_s9 + $0x38] sm:$0xff] }
  0xad   : > { %1951 = vmatmul.msk.f32.vlgmr.msra.gmra.mxu0 %vm920_vm0, %v918_v1  ;;  %1008 = vmatpush.msra.mxu2 %v985_v9  ;;  %v1072_v35 = vld [vmem:[#allocation13 + $0x8] sm:$0xff]  ;;  %v1071_v36 = vld [vmem:[#allocation13] sm:$0xff]  ;;  %v1150_v44 = vld [vmem:[%s3267_s9 + $0x30] sm:$0xff] }
  0xae   : > { %1954 = vmatmul.msk.f32.vlgmr.msra.gmra.mxu2 %vm989_vm2, %v984_v10  ;;  %1058 = vmatpush.msrb.mxu0 %v1041_v19  ;;  %v1149_v45 = vld [vmem:[%s3267_s9 + $0x28] sm:$0xff]  ;;  %v1148_v46 = vld [vmem:[%s3267_s9 + $0x20] sm:$0xff]  ;;  %v1147_v47 = vld [vmem:[%s3267_s9 + $0x18] sm:$0xff] }
  0xaf   : > { %v1146_v48 = vld [vmem:[%s3267_s9 + $0x10] sm:$0xff]  ;;  %v1145_v49 = vld [vmem:[%s3267_s9 + $0x8] sm:$0xff]  ;;  %v1144_v50 = vld [vmem:[%s3267_s9] sm:$0xff] }
  0xb0   : > { %1059 = vmatpush.msrb.mxu0 %v1040_v20  ;;  %v1201_v51 = vld [vmem:[%s3353_s8] sm:$0xff]  ;;  %v1200_v52 = vld [vmem:[%s772_s4] sm:$0xff]  ;;  %s913_s4 = scalar_lea.vmem [#allocation26], %s3043_s3  ;;  %s1612_s5 = scalar_lea.hbm %s3356_s11, %s3182_s1 }
  0xb1   : > { %v1176_v53 = vld [vmem:[#allocation14 + $0x8] sm:$0xff]  ;;  %v1175_v54 = vld [vmem:[#allocation14] sm:$0xff]  ;;  %v2147_v63 = vld [vmem:[#allocation11] ss:$0 sm:$0xff]  ;;  %s1616_s20 = sshll.u32 %s1612_s5, 4  ;;  %s2573_s30 = scalar_lea.hbm %s3356_s11, 16  ;;  %s1617_s20 = int_to_ptr.hbm [resolvable:$true] %s1616_s20 }
  0xb2   : > { %1060 = vmatpush.msrb.mxu0 %v1039_v21  ;;  %v1267_v8 = vld [vmem:[#allocation16 + $0x18] sm:$0xff]  ;;  %v1266_v9 = vld [vmem:[#allocation16 + $0x10] sm:$0xff]  ;;  %v1265_v10 = vld [vmem:[#allocation16 + $0x8] sm:$0xff]  ;;  %s2567_s8 = sshra.s32 %s1617_s20, 4  ;;  %s2568_s8 = int_to_ptr.hbm [resolvable:$true] %s2567_s8 }
  0xb3   : > { %1283 = vmatpush.msrb.mxu2 %v1267_v8  ;;  %v1321_v21 = vld [vmem:[#allocation17 + $0x38] sm:$0xff]  ;;  %p2574_p9 = scmp.lt.s32.totalorder %s2568_s8, %s3356_s11 }
  0xb4   : > { %1061 = vmatpush.msrb.mxu0 %v1038_v22  ;;  %v1320_v22 = vld [vmem:[#allocation17 + $0x30] sm:$0xff]  ;;  %v1438_v8 = vld [vmem:[#allocation20 + $0x78] sm:$0xff] }
  0xb5   : > { %1284 = vmatpush.msrb.mxu2 %v1266_v9  ;;  %v1435_v9 = vld [vmem:[#allocation20 + $0x60] sm:$0xff] }
  0xb6   : > { %1062 = vmatpush.msrb.mxu0 %v1037_v23  ;;  %v1319_v23 = vld [vmem:[#allocation17 + $0x28] sm:$0xff] }
  0xb7   : > { %1285 = vmatpush.msrb.mxu2 %v1265_v10  ;;  %v1436_v10 = vld [vmem:[#allocation20 + $0x68] sm:$0xff] }
  0xb8   : > { %1063 = vmatpush.msrb.mxu0 %v1036_v27  ;;  %v1315_v27 = vld [vmem:[#allocation17 + $0x8] sm:$0xff] }
  0xba   : > { %1163 = vmatpush.msra.mxu0 %v1151_v43  ;;  %v1352_v43 = vld [vmem:[#allocation19 + $0x20] sm:$0xff] }
  0xbc   : > { %1164 = vmatpush.msra.mxu0 %v1150_v44  ;;  %v1351_v44 = vld [vmem:[#allocation19 + $0x18] sm:$0xff] }
  0xbe   : > { %1165 = vmatpush.msra.mxu0 %v1149_v45  ;;  %v1350_v45 = vld [vmem:[#allocation19 + $0x10] sm:$0xff] }
  0xc0   : > { %1166 = vmatpush.msra.mxu0 %v1148_v46 }
  0xc2   : > { %1167 = vmatpush.msra.mxu0 %v1147_v47  ;;  %v1349_v47 = vld [vmem:[#allocation19 + $0x8] sm:$0xff] }
  0xc4   : > { %1168 = vmatpush.msra.mxu0 %v1146_v48  ;;  %v1348_v48 = vld [vmem:[#allocation19] sm:$0xff] }
  0xc6   : > { %1169 = vmatpush.msra.mxu0 %v1145_v49 }
  0xc8   : > { %1170 = vmatpush.msra.mxu0 %v1144_v50 }
 0x12a   : > { %v941_v2 = vpop.f32.mrf.mxu0 }
 0x12b   : > { %945 = vrot.lane.b32.xlu0 %v941_v2, %s2719_s26  ;;  %s906_s26 = scalar_lea.vmem [#allocation24], %s3043_s3 }
 0x12c   : > { %s1614_s13 = sshll.u32 %s906_s26, 4  ;;  %s1615_s13 = int_to_ptr.vmem [resolvable:$true] %s1614_s13 }
 0x131   : > { %v1010_v16 = vpop.f32.mrf.mxu2 }
 0x132   : > { %1031 = vmatpush.msra.mxu3 %v1010_v16 }
 0x134   : > { %1092 = vmatpush.msrb.mxu3 %v1078_v28 }
 0x136   : > { %1093 = vmatpush.msrb.mxu3 %v1077_v29 }
 0x138   : > { %1094 = vmatpush.msrb.mxu3 %v1076_v30 }
 0x13a   : > { %1095 = vmatpush.msrb.mxu3 %v1075_v31 }
 0x13c   : > { %1096 = vmatpush.msrb.mxu3 %v1074_v32 }
 0x13e   : > { %1097 = vmatpush.msrb.mxu3 %v1073_v33 }
 0x140   : > { %1098 = vmatpush.msrb.mxu3 %v1072_v35 }
 0x142   : > { %1099 = vmatpush.msrb.mxu3 %v1071_v36 }
 0x19d   : > { %v946_v3 = vpop.permute.xlu0 %945 }
 0x19e   : > { %1952 = vmatpush.xpose.msk.msra.mxu1 %vm947_vm1, %v946_v3 }
 0x1a1   : > { %1953 = vmatmul.msk.f32.vlgmr.msra.gmra.mxu1 %vm947_vm1, %v941_v2  ;;  %v2148_v2 = vld [vmem:[#allocation11 + $0x1] ss:$0 sm:$0xff] }
 0x1a2   : > { %1117 = vmatpush.msrb.mxu1 %v1078_v28 }
 0x1a4   : > { %1118 = vmatpush.msrb.mxu1 %v1077_v29 }
 0x1a6   : > { %1119 = vmatpush.msrb.mxu1 %v1076_v30 }
 0x1a8   : > { %1120 = vmatpush.msrb.mxu1 %v1075_v31  ;;  %v1314_v31 = vld [vmem:[#allocation17] sm:$0xff] }
 0x1aa   : > { %1121 = vmatpush.msrb.mxu1 %v1074_v32  ;;  %v1363_v32 = vld [vmem:[#allocation19 + $0x78] sm:$0xff] }
 0x1ac   : > { %1122 = vmatpush.msrb.mxu1 %v1073_v33  ;;  %v1362_v33 = vld [vmem:[#allocation19 + $0x70] sm:$0xff] }
 0x1ae   : > { %1123 = vmatpush.msrb.mxu1 %v1072_v35  ;;  %v1360_v35 = vld [vmem:[#allocation19 + $0x60] sm:$0xff] }
 0x1b0   : > { %1124 = vmatpush.msrb.mxu1 %v1071_v36  ;;  %v1359_v36 = vld [vmem:[#allocation19 + $0x58] sm:$0xff] }
 0x1b2   : > { %1366 = vmatpush.msra.mxu1 %v1363_v32 }
 0x1b4   : > { %1367 = vmatpush.msra.mxu1 %v1362_v33 }
 0x21e   : > { %v969_v6 = vpop.f32.mrf.mxu1 }
 0x21f   : > { %v972_v7 = vsel %vm920_vm0, %v969_v6, -inf }
 0x220   : > { %973 = vmax.xlane.f32.xlu0 %v972_v7 }
 0x293   : > { %v974_v11 = vpop.xlane.xlu0 %973 }
 0x294   : > { %v975_v12 = vsub.f32 %v969_v6, %v974_v11  ;;  %v1264_v11 = vld [vmem:[#allocation16] sm:$0xff] }
 0x295   : > { %1286 = vmatpush.msrb.mxu2 %v1264_v11  ;;  %v1433_v11 = vld [vmem:[#allocation20 + $0x50] sm:$0xff] }
 0x296   : > { %v976_v13 = vmul.f32 1.442695, %v975_v12  ;;  %v1263_v12 = vld [vmem:[%s782_s14] sm:$0xff]  ;;  %s2569_s14 = scalar_lea.hbm %s2568_s8, 8 }
 0x297   : > { %1964 = vmatmul.msk.f32.vlgmr.msrb.gmra.mxu2 %vm989_vm2, %v1263_v12  ;;  %v1434_v12 = vld [vmem:[#allocation20 + $0x58] sm:$0xff]  ;;  %p2570_p12 = scmp.ne.s32.totalorder %s2568_s8, %s2569_s14  ;;  %p2575_p2 = scmp.lt.s32.totalorder %s2573_s30, %s2569_s14 }
 0x298   : > { %2151 = vpow2.f32 %v976_v13  ;;  %1388 = vmatpush.msra.mxu2 %v1363_v32 }
 0x299   : > { %p2571_p3 = pnand %p2570_p12, %p2917_p0  ;;  %p2576_p5 = por %p2575_p2, %p2574_p9 }
 0x29a   : > { %1389 = vmatpush.msra.mxu2 %v1362_v33  ;;  %v1512_v33 = vld [vmem:[#allocation22 + $0x58] sm:$0xff] }
 0x29b   : > { %p2572_p8 = pneg %p2571_p3 }
 0x29d   : > { %p2577_p1 = pnand %p2576_p5, %p2572_p8 }
 0x29e   : > { %v2152_v14 = vpop.eup %2151 }
 0x29f   : > { %v978_v15 = vsel %vm920_vm0, %v2152_v14, 0.0 }
 0x2a0   : > { %979 = vadd.xlane.f32.xlu1 %v978_v15 }
 0x313   : > { %v980_v24 = vpop.xlane.xlu1 %979 }
 0x314   : > { %2153 = vrcp.f32 %v980_v24  ;;  %v1318_v24 = vld [vmem:[#allocation17 + $0x20] sm:$0xff] }
 0x31a   : > { %v2154_v25 = vpop.eup %2153  ;;  %v1288_v20 = vpop.f32.mrf.mxu2 }
 0x31b   : > { %v982_v26 = vmul.f32 %v2154_v25, %v2152_v14  ;;  %v1317_v25 = vld [vmem:[#allocation17 + $0x18] sm:$0xff] }
 0x31d   : > { %1955 = vmatmul.msk.f32.vlgmr.msra.gmra.mxu3 %vm920_vm0, %v982_v26  ;;  %983 = vst.msk [vmem:[%s906_s26] sm:$0xff] %vm920_vm0, %v982_v26  ;;  %v1316_v26 = vld [vmem:[#allocation17 + $0x10] sm:$0xff] }
 0x31e   : > { %1220 = vmatpush.msra.mxu3 %v1201_v51 }
 0x3a0   : > { %v1033_v34 = vpop.f32.mrf.mxu3 }
 0x3a1   : > { %1956 = vmatmul.msk.f32.vlgmr.msrb.gmra.mxu0 %vm1044_vm3, %v1033_v34  ;;  %v1361_v34 = vld [vmem:[#allocation19 + $0x68] sm:$0xff] }
 0x3a2   : > { %1194 = vmatpush.msrb.mxu0 %v1176_v53  ;;  %1368 = vmatpush.msra.mxu1 %v1361_v34  ;;  %v1454_v53 = vld [vmem:[#allocation20 + $0xf8] sm:$0xff] }
 0x3a3   : > { %1390 = vmatpush.msra.mxu2 %v1361_v34  ;;  %v1528_v34 = vld [vmem:[#allocation22 + $0xd8] sm:$0xff] }
 0x3a4   : > { %1195 = vmatpush.msrb.mxu0 %v1175_v54  ;;  %1369 = vmatpush.msra.mxu1 %v1360_v35  ;;  %v1451_v54 = vld [vmem:[#allocation20 + $0xe0] sm:$0xff] }
 0x3a5   : > { %1391 = vmatpush.msra.mxu2 %v1360_v35  ;;  %v1511_v35 = vld [vmem:[#allocation22 + $0x50] sm:$0xff] }
 0x3a6   : > { %1370 = vmatpush.msra.mxu1 %v1359_v36 }
 0x3a7   : > { %1392 = vmatpush.msra.mxu2 %v1359_v36  ;;  %v1527_v36 = vld [vmem:[#allocation22 + $0xd0] sm:$0xff] }
 0x41e   : > { %v1065_v37 = vpop.f32.mrf.mxu0 }
 0x41f   : > { %vm1068_vm4 = vcmp.gt.f32.partialorder %v1065_v37, 0.0  ;;  %v1069_v38 = vmul.f32 0.2, %v1065_v37 }
 0x421   : > { %v1070_v39 = vsel %vm1068_vm4, %v1065_v37, %v1069_v38  ;;  %v1358_v37 = vld [vmem:[#allocation19 + $0x50] sm:$0xff]  ;;  %v1357_v38 = vld [vmem:[#allocation19 + $0x48] sm:$0xff] }
 0x422   : > { %1957 = vmatmul.msk.f32.vlgmr.msrb.gmra.mxu3 %vm1044_vm3, %v1070_v39  ;;  %1371 = vmatpush.msra.mxu1 %v1358_v37 }
 0x423   : > { %1393 = vmatpush.msra.mxu2 %v1358_v37  ;;  %v1510_v37 = vld [vmem:[#allocation22 + $0x48] sm:$0xff] }
 0x424   : > { %1372 = vmatpush.msra.mxu1 %v1357_v38 }
 0x425   : > { %1394 = vmatpush.msra.mxu2 %v1357_v38  ;;  %v1526_v38 = vld [vmem:[#allocation22 + $0xc8] sm:$0xff] }
 0x42a   : > { %1961 = vmatmul.msk.f32.vlgmr.msra.gmra.mxu3 %vm920_vm0, %v1200_v52  ;;  %v1453_v52 = vld [vmem:[#allocation20 + $0xf0] sm:$0xff] }
 0x4a5   : > { %v1101_v40 = vpop.f32.mrf.mxu3 }
 0x4a6   : > { %v1104_v41 = vsub.f32 %v1070_v39, %v1101_v40  ;;  %v1356_v39 = vld [vmem:[#allocation19 + $0x40] sm:$0xff]  ;;  %v1355_v40 = vld [vmem:[#allocation19 + $0x38] sm:$0xff] }
 0x4a7   : > { %1373 = vmatpush.msra.mxu1 %v1356_v39  ;;  %1395 = vmatpush.msra.mxu2 %v1356_v39  ;;  %v1509_v39 = vld [vmem:[#allocation22 + $0x40] sm:$0xff] }
 0x4a8   : > { %v1105_v42 = vmul.f32 %v1104_v41, %v1104_v41 }
 0x4a9   : > { %1374 = vmatpush.msra.mxu1 %v1355_v40  ;;  %1396 = vmatpush.msra.mxu2 %v1355_v40  ;;  %v1525_v40 = vld [vmem:[#allocation22 + $0xc0] sm:$0xff] }
 0x4aa   : > { %1958 = vmatmul.msk.f32.vlgmr.msrb.gmra.mxu1 %vm1044_vm3, %v1105_v42  ;;  %v1353_v42 = vld [vmem:[#allocation19 + $0x28] sm:$0xff] }
 0x4ad   : > { %v1222_v5 = vpop.f32.mrf.mxu3 }
 0x4ae   : > { %1962 = vmatpush.xpose.msk.msrb.mxu3 %vm947_vm1, %v1222_v5  ;;  %v1439_v5 = vld [vmem:[#allocation20 + $0x80] sm:$0xff] }
 0x4b2   : > { %1333 = vmatpush.msra.mxu3 %v1321_v21  ;;  %v1423_v21 = vld [vmem:[#allocation20] sm:$0xff] }
 0x4b4   : > { %1334 = vmatpush.msra.mxu3 %v1320_v22  ;;  %v1424_v22 = vld [vmem:[#allocation20 + $0x8] sm:$0xff] }
 0x4b6   : > { %1335 = vmatpush.msra.mxu3 %v1319_v23  ;;  %v1516_v23 = vld [vmem:[#allocation22 + $0x78] sm:$0xff] }
 0x4b8   : > { %1336 = vmatpush.msra.mxu3 %v1318_v24  ;;  %v1515_v24 = vld [vmem:[#allocation22 + $0x70] sm:$0xff] }
 0x4ba   : > { %1337 = vmatpush.msra.mxu3 %v1317_v25  ;;  %v1532_v25 = vld [vmem:[#allocation22 + $0xf8] sm:$0xff] }
 0x4bc   : > { %1338 = vmatpush.msra.mxu3 %v1316_v26  ;;  %v1514_v26 = vld [vmem:[#allocation22 + $0x68] sm:$0xff] }
 0x4be   : > { %1339 = vmatpush.msra.mxu3 %v1315_v27  ;;  %v1531_v27 = vld [vmem:[#allocation22 + $0xf0] sm:$0xff] }
 0x4c0   : > { %1340 = vmatpush.msra.mxu3 %v1314_v31  ;;  %v1529_v31 = vld [vmem:[#allocation22 + $0xe0] sm:$0xff] }
 0x527   : > { %v1126_v55 = vpop.f32.mrf.mxu1 }
 0x528   : > { %v1127_v56 = vadd.f32 1e-05, %v1126_v55  ;;  %v1452_v55 = vld [vmem:[#allocation20 + $0xe8] sm:$0xff] }
 0x52a   : > { %2155 = vrsqrt.f32 %v1127_v56  ;;  %vm1135_vm6 = vweird.f32 %v1127_v56 }
 0x530   : > { %v2156_v57 = vpop.eup %2155 }
 0x531   : > { %v1130_v58 = vmul.f32 %v2156_v57, %v1127_v56  ;;  %vm1136_vm5 = vweird.f32 %v2156_v57 }
 0x532   : > { %vm1137_vm7 = vmor %vm1135_vm6, %vm1136_vm5 }
 0x533   : > { %v1131_v59 = vmul.f32 %v2156_v57, %v1130_v58 }
 0x535   : > { %v1132_v60 = vmul.f32 0.5, %v1131_v59  ;;  %v1449_v59 = vld [vmem:[#allocation20 + $0xd0] sm:$0xff] }
 0x537   : > { %v1133_v61 = vsub.f32 1.5, %v1132_v60  ;;  %v1450_v60 = vld [vmem:[#allocation20 + $0xd8] sm:$0xff] }
 0x539   : > { %v1134_v62 = vmul.f32 %v2156_v57, %v1133_v61  ;;  %v1447_v61 = vld [vmem:[#allocation20 + $0xc0] sm:$0xff] }
 0x53b   : > { %v1138_v0 = vsel %vm1137_vm7, %v2156_v57, %v1134_v62  ;;  %v1448_v62 = vld [vmem:[#allocation20 + $0xc8] sm:$0xff] }
 0x53c   : > { %v1139_v1 = vmul.f32 %v1138_v0, %v1104_v41  ;;  %v1354_v41 = vld [vmem:[#allocation19 + $0x30] sm:$0xff]  ;;  %v1446_v0 = vld [vmem:[#allocation20 + $0xb8] sm:$0xff] }
 0x53d   : > { %1375 = vmatpush.msra.mxu1 %v1354_v41  ;;  %1397 = vmatpush.msra.mxu2 %v1354_v41 }
 0x53e   : > { %v1141_v3 = vmul.f32 %v2147_v63, %v1139_v1  ;;  %v1445_v63 = vld [vmem:[#allocation20 + $0xb0] sm:$0xff]  ;;  %v1443_v1 = vld [vmem:[#allocation20 + $0xa0] sm:$0xff] }
 0x53f   : > { %1376 = vmatpush.msra.mxu1 %v1353_v42  ;;  %1398 = vmatpush.msra.mxu2 %v1353_v42  ;;  %v1508_v42 = vld [vmem:[#allocation22 + $0x38] sm:$0xff] }
 0x540   : > { %v1143_v4 = vadd.f32 %v2148_v2, %v1141_v3  ;;  %v1444_v2 = vld [vmem:[#allocation20 + $0xa8] sm:$0xff]  ;;  %v1441_v3 = vld [vmem:[#allocation20 + $0x90] sm:$0xff] }
 0x541   : > { %1377 = vmatpush.msra.mxu1 %v1352_v43  ;;  %1399 = vmatpush.msra.mxu2 %v1352_v43 }
 0x542   : > { %1959 = vmatmul.msk.f32.vlgmr.msra.gmra.mxu0 %vm1044_vm3, %v1143_v4  ;;  %v1442_v4 = vld [vmem:[#allocation20 + $0x98] sm:$0xff] }
 0x543   : > { %1309 = vmatpush.msra.mxu0 %v1288_v20  ;;  %1378 = vmatpush.msra.mxu1 %v1351_v44  ;;  %v1426_v20 = vld [vmem:[#allocation20 + $0x18] sm:$0xff] }
 0x544   : > { %1400 = vmatpush.msra.mxu2 %v1351_v44  ;;  %v1524_v44 = vld [vmem:[#allocation22 + $0xb8] sm:$0xff] }
 0x545   : > { %1379 = vmatpush.msra.mxu1 %v1350_v45 }
 0x546   : > { %1401 = vmatpush.msra.mxu2 %v1350_v45  ;;  %v1507_v45 = vld [vmem:[#allocation22 + $0x30] sm:$0xff] }
 0x547   : > { %1380 = vmatpush.msra.mxu1 %v1349_v47 }
 0x548   : > { %1402 = vmatpush.msra.mxu2 %v1349_v47  ;;  %v1523_v47 = vld [vmem:[#allocation22 + $0xb0] sm:$0xff] }
 0x549   : > { %1381 = vmatpush.msra.mxu1 %v1348_v48 }
 0x54a   : > { %1403 = vmatpush.msra.mxu2 %v1348_v48  ;;  %v1506_v48 = vld [vmem:[#allocation22 + $0x28] sm:$0xff] }
 0x54b   : > { %1533 = vmatpush.msrb.mxu1 %v1516_v23 }
 0x54c   : > { %1553 = vmatpush.msrb.mxu2 %v1532_v25 }
 0x54d   : > { %1534 = vmatpush.msrb.mxu1 %v1515_v24 }
 0x54e   : > { %1554 = vmatpush.msrb.mxu2 %v1531_v27 }
 0x54f   : > { %1535 = vmatpush.msrb.mxu1 %v1514_v26 }
 0x5bf   : > { %v1172_v6 = vpop.f32.mrf.mxu0 }
 0x5c0   : > { %1960 = vmatmul.msk.f32.vlgmr.msrb.gmra.mxu0 %vm947_vm1, %v1172_v6  ;;  %v1440_v6 = vld [vmem:[#allocation20 + $0x88] sm:$0xff] }
 0x5c1   : > { %1455 = vmatpush.msrb.mxu0 %v1453_v52 }
 0x5c3   : > { %1456 = vmatpush.msrb.mxu0 %v1451_v54 }
 0x5c5   : > { %1457 = vmatpush.msrb.mxu0 %v1449_v59 }
 0x5c7   : > { %1458 = vmatpush.msrb.mxu0 %v1447_v61 }
 0x5c9   : > { %1459 = vmatpush.msrb.mxu0 %v1445_v63  ;;  %v1502_v63 = vld [vmem:[#allocation22 + $0x8] sm:$0xff] }
 0x5cb   : > { %1460 = vmatpush.msrb.mxu0 %v1443_v1  ;;  %v1501_v1 = vld [vmem:[#allocation22] sm:$0xff] }
 0x5cd   : > { %1461 = vmatpush.msrb.mxu0 %v1441_v3  ;;  %v1519_v3 = vld [vmem:[#allocation22 + $0x90] sm:$0xff] }
 0x5cf   : > { %1462 = vmatpush.msrb.mxu0 %v1439_v5 }
 0x63d   : > { %v1197_v7 = vpop.f32.mrf.mxu0 }
 0x63e   : > { %1963 = vmatmul.msk.f32.vlgmr.msrb.gmra.mxu3 %vm947_vm1, %v1197_v7  ;;  %v1437_v7 = vld [vmem:[#allocation20 + $0x70] sm:$0xff] }
 0x63f   : > { %1475 = vmatpush.msrb.mxu3 %v1454_v53  ;;  %1463 = vmatpush.msrb.mxu0 %v1437_v7  ;;  %v1504_v53 = vld [vmem:[#allocation22 + $0x18] sm:$0xff] }
 0x641   : > { %1476 = vmatpush.msrb.mxu3 %v1452_v55  ;;  %1464 = vmatpush.msrb.mxu0 %v1435_v9  ;;  %v2149_v55 = vld [vmem:[%s3354_s29] ss:$0 sm:$0xff] }
 0x643   : > { %1477 = vmatpush.msrb.mxu3 %v1450_v60  ;;  %1465 = vmatpush.msrb.mxu0 %v1433_v11  ;;  %v2150_v60 = vld [vmem:[%s3354_s29 + $0x1] ss:$0 sm:$0xff] }
 0x645   : > { %1478 = vmatpush.msrb.mxu3 %v1448_v62 }
 0x647   : > { %1479 = vmatpush.msrb.mxu3 %v1446_v0  ;;  %v1521_v0 = vld [vmem:[#allocation22 + $0xa0] sm:$0xff] }
 0x649   : > { %1480 = vmatpush.msrb.mxu3 %v1444_v2  ;;  %v1520_v2 = vld [vmem:[#allocation22 + $0x98] sm:$0xff] }
 0x64b   : > { %1481 = vmatpush.msrb.mxu3 %v1442_v4  ;;  %v1517_v4 = vld [vmem:[#allocation22 + $0x80] sm:$0xff] }
 0x64d   : > { %1482 = vmatpush.msrb.mxu3 %v1440_v6 }
 0x64f   : > { %1483 = vmatpush.msrb.mxu3 %v1438_v8 }
 0x651   : > { %1484 = vmatpush.msrb.mxu3 %v1436_v10 }
 0x653   : > { %1485 = vmatpush.msrb.mxu3 %v1434_v12 }
 0x6c1   : > { %v1248_v13 = vpop.f32.mrf.mxu3 }
 0x6c2   : > { %v1251_v14 = vsel %vm920_vm0, %v1248_v13, -inf }
 0x6c3   : > { %1252 = vmax.xlane.f32.xlu1 %v1251_v14  ;;  %v1432_v14 = vld [vmem:[#allocation20 + $0x48] sm:$0xff] }
 0x6c4   : > { %1486 = vmatpush.msrb.mxu3 %v1432_v14 }
 0x736   : > { %v1253_v15 = vpop.xlane.xlu1 %1252 }
 0x737   : > { %v1254_v16 = vsub.f32 %v1248_v13, %v1253_v15  ;;  %v1431_v13 = vld [vmem:[#allocation20 + $0x40] sm:$0xff]  ;;  %v1429_v15 = vld [vmem:[#allocation20 + $0x30] sm:$0xff] }
 0x738   : > { %1466 = vmatpush.msrb.mxu0 %v1431_v13 }
 0x739   : > { %v1255_v17 = vmul.f32 1.442695, %v1254_v16  ;;  %v1430_v16 = vld [vmem:[#allocation20 + $0x38] sm:$0xff] }
 0x73a   : > { %1467 = vmatpush.msrb.mxu0 %v1429_v15  ;;  %1487 = vmatpush.msrb.mxu3 %v1430_v16 }
 0x73b   : > { %2157 = vpow2.f32 %v1255_v17  ;;  %v1427_v17 = vld [vmem:[#allocation20 + $0x20] sm:$0xff] }
 0x73c   : > { %1468 = vmatpush.msrb.mxu0 %v1427_v17 }
 0x741   : > { %v2158_v18 = vpop.eup %2157 }
 0x742   : > { %v1257_v19 = vsel %vm920_vm0, %v2158_v18, 0.0 }
 0x743   : > { %1258 = vadd.xlane.f32.xlu2 %v1257_v19  ;;  %v1425_v19 = vld [vmem:[#allocation20 + $0x10] sm:$0xff] }
 0x744   : > { %1469 = vmatpush.msrb.mxu0 %v1425_v19 }
 0x746   : > { %1470 = vmatpush.msrb.mxu0 %v1423_v21 }
 0x7b6   : > { %v1259_v28 = vpop.xlane.xlu2 %1258 }
 0x7b7   : > { %2159 = vrcp.f32 %v1259_v28  ;;  %v1530_v28 = vld [vmem:[#allocation22 + $0xe8] sm:$0xff] }
 0x7b8   : > { %1555 = vmatpush.msrb.mxu2 %v1530_v28 }
 0x7ba   : > { %1556 = vmatpush.msrb.mxu2 %v1529_v31 }
 0x7bc   : > { %1557 = vmatpush.msrb.mxu2 %v1528_v34 }
 0x7bd   : > { %v2160_v29 = vpop.eup %2159 }
 0x7be   : > { %v1261_v30 = vmul.f32 %v2160_v29, %v2158_v18  ;;  %v1428_v18 = vld [vmem:[#allocation20 + $0x28] sm:$0xff]  ;;  %v1513_v29 = vld [vmem:[#allocation22 + $0x60] sm:$0xff]  ;;  %1558 = vmatpush.msrb.mxu2 %v1527_v36 }
 0x7bf   : > { %1488 = vmatpush.msrb.mxu3 %v1428_v18  ;;  %1536 = vmatpush.msrb.mxu1 %v1513_v29 }
 0x7c0   : > { %1965 = vmatmul.msk.f32.vlgmr.msra.gmra.mxu0 %vm920_vm0, %v1261_v30  ;;  %1262 = vst.msk [vmem:[%s913_s4] sm:$0xff] %vm920_vm0, %v1261_v30  ;;  %1559 = vmatpush.msrb.mxu2 %v1526_v38 }
 0x7c1   : > { %1489 = vmatpush.msrb.mxu3 %v1426_v20  ;;  %1537 = vmatpush.msrb.mxu1 %v1512_v33 }
 0x7c2   : > { %1560 = vmatpush.msrb.mxu2 %v1525_v40 }
 0x7c3   : > { %1490 = vmatpush.msrb.mxu3 %v1424_v22  ;;  %1538 = vmatpush.msrb.mxu1 %v1511_v35 }
 0x7c4   : > { %1561 = vmatpush.msrb.mxu2 %v1524_v44 }
 0x7c5   : > { %1539 = vmatpush.msrb.mxu1 %v1510_v37 }
 0x7c6   : > { %1562 = vmatpush.msrb.mxu2 %v1523_v47 }
 0x7c7   : > { %1540 = vmatpush.msrb.mxu1 %v1509_v39 }
 0x7c9   : > { %1541 = vmatpush.msrb.mxu1 %v1508_v42 }
 0x7cb   : > { %1542 = vmatpush.msrb.mxu1 %v1507_v45 }
 0x7cd   : > { %1543 = vmatpush.msrb.mxu1 %v1506_v48 }
 0x83d   : > { %v1311_v46 = vpop.f32.mrf.mxu0 }
 0x83e   : > { %1966 = vmatmul.msk.f32.vlgmr.msra.gmra.mxu3 %vm1044_vm3, %v1311_v46 }
 0x8c1   : > { %v1342_v49 = vpop.f32.mrf.mxu3 }
 0x8c2   : > { %vm1345_vm8 = vcmp.gt.f32.partialorder %v1342_v49, 0.0  ;;  %v1346_v50 = vmul.f32 0.2, %v1342_v49 }
 0x8c4   : > { %v1347_v51 = vsel %vm1345_vm8, %v1342_v49, %v1346_v50  ;;  %v1522_v50 = vld [vmem:[#allocation22 + $0xa8] sm:$0xff] }
 0x8c5   : > { %1382 = vmatmul.f32.vlgmr.msra.gmra.mxu1 %v1347_v51  ;;  %1563 = vmatpush.msrb.mxu2 %v1522_v50 }
 0x8c7   : > { %1564 = vmatpush.msrb.mxu2 %v1521_v0 }
 0x8c9   : > { %1565 = vmatpush.msrb.mxu2 %v1520_v2 }
 0x8cb   : > { %1566 = vmatpush.msrb.mxu2 %v1519_v3 }
 0x942   : > { %v1383_v56 = vpop.f32.mrf.mxu1 }
 0x943   : > { %v3170_v57 = vsub.f32 %v1347_v51, %v1383_v56  ;;  %v1505_v51 = vld [vmem:[#allocation22 + $0x20] sm:$0xff]  ;;  %v1503_v56 = vld [vmem:[#allocation22 + $0x10] sm:$0xff] }
 0x944   : > { %1544 = vmatpush.msrb.mxu1 %v1505_v51 }
 0x945   : > { %v1387_v58 = vmul.f32 %v3170_v57, %v3170_v57 }
 0x946   : > { %1545 = vmatpush.msrb.mxu1 %v1504_v53 }
 0x947   : > { %1404 = vmatmul.f32.vlgmr.msra.gmra.mxu2 %v1387_v58 }
 0x948   : > { %1546 = vmatpush.msrb.mxu1 %v1503_v56 }
 0x94a   : > { %1547 = vmatpush.msrb.mxu1 %v1502_v63 }
 0x94c   : > { %1548 = vmatpush.msrb.mxu1 %v1501_v1 }
 0x9ca   : > { %v1405_v30 = vpop.f32.mrf.mxu2 }
 0x9cb   : > { %v1406_v32 = vadd.f32 1e-05, %v1405_v30 }
 0x9cd   : > { %2161 = vrsqrt.f32 %v1406_v32  ;;  %vm1414_vm10 = vweird.f32 %v1406_v32 }
 0x9d3   : > { %v2162_v41 = vpop.eup %2161 }
 0x9d4   : > { %v1409_v43 = vmul.f32 %v2162_v41, %v1406_v32  ;;  %vm1415_vm9 = vweird.f32 %v2162_v41 }
 0x9d5   : > { %vm1416_vm11 = vmor %vm1414_vm10, %vm1415_vm9 }
 0x9d6   : > { %v1410_v46 = vmul.f32 %v2162_v41, %v1409_v43 }
 0x9d8   : > { %v1411_v49 = vmul.f32 0.5, %v1410_v46 }
 0x9da   : > { %v1412_v52 = vsub.f32 1.5, %v1411_v49 }
 0x9dc   : > { %v1413_v54 = vmul.f32 %v2162_v41, %v1412_v52 }
 0x9de   : > { %v1417_v58 = vsel %vm1416_vm11, %v2162_v41, %v1413_v54 }
 0x9df   : > { %v1418_v59 = vmul.f32 %v1417_v58, %v3170_v57  ;;  %v1518_v57 = vld [vmem:[#allocation22 + $0x88] sm:$0xff] }
 0x9e0   : > { %1567 = vmatpush.msrb.mxu2 %v1518_v57 }
 0x9e1   : > { %v1420_v61 = vmul.f32 %v2149_v55, %v1418_v59 }
 0x9e2   : > { %1568 = vmatpush.msrb.mxu2 %v1517_v4 }
 0x9e3   : > { %v1422_v62 = vadd.f32 %v2150_v60, %v1420_v61 }
 0x9e5   : > { %1471 = vmatmul.f32.vlgmr.msrb.gmra.mxu0 %v1422_v62  ;;  %1491 = vmatmul.f32.vlgmr.msrb.gmra.mxu3 %v1422_v62 }
 0xa62   : > { %v1472_v5 = vpop.f32.mrf.mxu0 }
 0xa63   : > { %vm1495_vm12 = vcmp.gt.f32.partialorder %v1472_v5, 0.0  ;;  %v1497_v6 = vmul.f32 0.2, %v1472_v5 }
 0xa65   : > { %v1499_v7 = vsel %vm1495_vm12, %v1472_v5, %v1497_v6 }
 0xa66   : > { %1549 = vmatmul.f32.vlgmr.msrb.gmra.mxu1 %v1499_v7 }
 0xa68   : > { %v1492_v8 = vpop.f32.mrf.mxu3 }
 0xa69   : > { %vm1496_vm13 = vcmp.gt.f32.partialorder %v1492_v8, 0.0  ;;  %v1498_v9 = vmul.f32 0.2, %v1492_v8 }
 0xa6b   : > { %v1500_v10 = vsel %vm1496_vm13, %v1492_v8, %v1498_v9 }
 0xa6c   : > { %1569 = vmatmul.f32.vlgmr.msrb.gmra.mxu2 %v1500_v10 }
 0xa6d   : > { %2580 = shalt.err (!%p2577_p1)
}
 0xa6e   : > { %2022 = dma.vmem_to_hbm [thread:$0]  (%p2917_p0), %s1615_s13, 128, %s1617_s20, %s3192_s10  }
 0xa6f   : > { %s3357_s26 = sld [smem:[#allocation57_spill]]  ;;  %s1628_s7 = sshll.u32 %s913_s4, 4  ;;  %s1629_s7 = int_to_ptr.vmem [resolvable:$true] %s1628_s7 }
 0xa75   : > { %s1626_s5 = scalar_lea.hbm %s3357_s26, %s3182_s1  ;;  %s2601_s13 = scalar_lea.hbm %s3357_s26, 16 }
 0xa76   : > { %s1630_s19 = sshll.u32 %s1626_s5, 4  ;;  %s1631_s19 = int_to_ptr.hbm [resolvable:$true] %s1630_s19 }
 0xa77   : > { %s2595_s8 = sshra.s32 %s1631_s19, 4  ;;  %s2596_s8 = int_to_ptr.hbm [resolvable:$true] %s2595_s8 }
 0xa78   : > { %s2597_s14 = scalar_lea.hbm %s2596_s8, 8  ;;  %p2602_p6 = scmp.lt.s32.totalorder %s2596_s8, %s3357_s26 }
 0xa79   : > { %p2598_p13 = scmp.ne.s32.totalorder %s2596_s8, %s2597_s14  ;;  %p2603_p11 = scmp.lt.s32.totalorder %s2601_s13, %s2597_s14 }
 0xa7b   : > { %p2599_p7 = pnand %p2598_p13, %p2917_p0  ;;  %p2604_p12 = por %p2603_p11, %p2602_p6 }
 0xa7d   : > { %p2600_p10 = pneg %p2599_p7 }
 0xa7f   : > { %p2605_p3 = pnand %p2604_p12, %p2600_p10 }
 0xa81   : > { %2608 = shalt.err (!%p2605_p3)
}
 0xa82   : > { %2023 = dma.vmem_to_hbm [thread:$0]  (%p2917_p0), %s1629_s7, 128, %s1631_s19, %s3192_s10  }
 0xa83   : > { %s3358_s28 = sld [smem:[#allocation55_spill]]  ;;  %s899_s8 = scalar_lea.vmem [#allocation23], %s3043_s3 }
 0xa84   : > { %s1600_s14 = sshll.u32 %s899_s8, 4  ;;  %s1578_s16 = scalar_lea.sflag [#allocation4], %s3040_s21  ;;  %s1601_s14 = int_to_ptr.vmem [resolvable:$true] %s1600_s14 }
 0xa89   : > { %s1598_s5 = scalar_lea.hbm %s3358_s28, %s3182_s1  ;;  %s2629_s3 = scalar_lea.hbm %s3358_s28, 16 }
 0xa8a   : > { %s1602_s30 = sshll.u32 %s1598_s5, 4  ;;  %s1603_s30 = int_to_ptr.hbm [resolvable:$true] %s1602_s30 }
 0xa8b   : > { %s2623_s13 = sshra.s32 %s1603_s30, 4  ;;  %s2624_s13 = int_to_ptr.hbm [resolvable:$true] %s2623_s13 }
 0xa8c   : > { %s2625_s10 = scalar_lea.hbm %s2624_s13, 8  ;;  %p2630_p5 = scmp.lt.s32.totalorder %s2624_s13, %s3358_s28 }
 0xa8d   : > { %p2626_p8 = scmp.ne.s32.totalorder %s2624_s13, %s2625_s10  ;;  %p2631_p1 = scmp.lt.s32.totalorder %s2629_s3, %s2625_s10 }
 0xa8f   : > { %p2627_p9 = pnand %p2626_p8, %p2917_p0  ;;  %p2632_p13 = por %p2631_p1, %p2630_p5 }
 0xa91   : > { %p2628_p2 = pneg %p2627_p9 }
 0xa93   : > { %p2633_p7 = pnand %p2632_p13, %p2628_p2 }
 0xae3   : > { %v1550_v11 = vpop.f32.mrf.mxu1 }
 0xaef   : > { %v1570_v12 = vpop.f32.mrf.mxu2 }
 0xaf0   : > { %v1571_v13 = vadd.f32 %v1570_v12, %v1550_v11 }
 0xaf2   : > { %vm1573_vm14 = vcmp.gt.f32.partialorder %v1571_v13, 0.0  ;;  %v1574_v14 = vmul.f32 0.2, %v1571_v13 }
 0xaf4   : > { %v1575_v15 = vsel %vm1573_vm14, %v1571_v13, %v1574_v14 }
 0xaf5   : > { %1576 = vst [vmem:[%s899_s8] sm:$0xff] %v1575_v15 }
 0xaf6   : > { %2636 = shalt.err (!%p2633_p7)
}
 0xaf7   : > { %2021 = dma.vmem_to_hbm [thread:$0]  (%p2917_p0), %s1601_s14, 128, %s1603_s30, %s1578_s16  }
 0xaf8 PF: > { %s3359_s21 = sld [smem:[#allocation36_spill]] }
 0xaf9   : > { %s3361_s4 = sld [smem:[#allocation37_spill]] }
 0xafe   : > { %s1642_s27 = sand.u32 1, %s3359_s21  }
 0xaff   : > { %p3362_p10 = scmp.ge.s32.totalorder %s3361_s4, 2  ;;  %s1643_s5 = scalar_lea.sflag [#allocation4], %s1642_s27 }
 0xb01   : > { %p2069_p6 = pnand %p3362_p10, %p2925_p4 }
 0xb03   : > { %p2070_p11 = pneg %p2069_p6 }
 0xb05   : > { %2682 = dma.done.wait (%p2070_p11), %s1643_s5, 128  }
 0xb06   : > { %2684 = vsyncadd (%p2070_p11), %s1643_s5, 4294967168  ;;  %s3363_s8 = sadd.s32 4294967294, %s3361_s4  }
 0xb07   : > { %s1652_s13 = sand.u32 1, %s3363_s8  }
 0xb08   : > { %s1653_s10 = scalar_lea.sflag [#allocation25], %s1652_s13 }
 0xb09   : > { %2686 = dma.done.wait (%p2070_p11), %s1653_s10, 256  }
 0xb0a   : > { %2688 = vsyncadd (%p2070_p11), %s1653_s10, 4294967040  ;;  %s3364_s24 = sld [smem:[#allocation38_spill]]  ;;  %s3366_s1 = smov %s2695_s22 }
 0xb0b   : > { %s3365_s2 = sld [smem:[#allocation39_spill]]  ;;  %s3367_s22 = smov %s2699_s23 }
 0xb10   : > { %p45_p0 = scmp.ge.s32.totalorder %s3364_s24, 4  }
 0xb11   : > { %s3368_s23 = smov %s3365_s2 }
 0xb12   :  { %47 = sbr.rel (!%p45_p0) target bundleno = 31 (0x1f), region = 236 }
 0xb17   :  { %1669 = vsyncpa [#allocation3], 1 }
 0xb18   :  { %1671 = vsyncpa [#allocation3 + $0x1], 1 }
 0xb19   :  { %1672 = vsyncpa [#allocation6], 1 }
 0xb1a   :  { %1674 = vsyncpa [#allocation6 + $0x1], 1 }
 0xb1b   :  { %1675 = vsyncpa [#allocation9], 1 }
 0xb1c   :  { %1676 = vsyncpa [#allocation12], 1 }
 0xb1d   :  { %1677 = vsyncpa [#allocation15], 1 }
 0xb1e   :  { %1678 = vsyncpa [#allocation18], 1 }
 0xb1f   :  { %1679 = vsyncpa [#allocation21], 1 }
 0xb20   :  { %1680 = vsyncpa [#allocation4], 1 }
 0xb21   :  { %1682 = vsyncpa [#allocation4 + $0x1], 1 }
 0xb22   :  { %1683 = vsyncpa [#allocation25], 1 }
 0xb23   :  { %1685 = vsyncpa [#allocation25 + $0x1], 1 }

</bundles_post_ra>
